<compile_context>
chip_gen: v7x
topology: tpu7x:2x2x1
jax: 0.10.0
libtpu: 0.0.40
codegen_flags: <defaults>
</compile_context>

<pallas_src>
import jax
import jax.numpy as jnp
from jax.experimental import pallas as pl
from jax.experimental.pallas import tpu as pltpu

HID = 10                       # true hidden width of the module
PAD = 128                      # lane width used for the hidden features
NUM_CLASSES = 3
TILE_B = 1024                  # rows per grid step (multiple of 8)
MATMUL_DTYPE = jnp.bfloat16    # jnp.float32 for an exact-f32 path


def _t_gaussian_kernel(xy_ref,
                       w1r_ref, b1_ref,
                       w2_ref, b2_ref,
                       w3_ref, b3_ref,
                       embT_ref, bm_ref,
                       out_ref):
    # --- unpack the packed (x, y) operand -----------------------------------
    xy = xy_ref[...]                                  # (TILE_B, 2) f32
    x = xy[:, 0:1]                                    # (TILE_B, 1) sample
    yv = xy[:, 1:2]                                   # (TILE_B, 1) class id (f32)

    # --- layer 1: Linear(1,10)+Tanh as a rank-1 VPU broadcast FMA -----------
    h = jnp.tanh(x * w1r_ref[...] + b1_ref[...])      # (TILE_B, PAD) f32

    # --- layers 2,3: bf16 MXU matmuls with f32 accumulate; pad lanes stay 0 -
    h = jnp.tanh(jnp.dot(h.astype(MATMUL_DTYPE), w2_ref[...],
                         preferred_element_type=jnp.float32) + b2_ref[...])
    h = jnp.tanh(jnp.dot(h.astype(MATMUL_DTYPE), w3_ref[...],
                         preferred_element_type=jnp.float32) + b3_ref[...])

    # --- class scores on the MXU (emb table already has wm folded in):
    #     scores[:, c] = h @ (emb[c] + wm)  ==  mine_linear(h) - bm + emb[c].h
    scores = jnp.dot(h.astype(MATMUL_DTYPE), embT_ref[...],
                     preferred_element_type=jnp.float32)      # (TILE_B, PAD)

    # --- pick each row's class column with a lane-iota mask + reduce --------
    lane = jax.lax.broadcasted_iota(jnp.int32, scores.shape, 1)
    cls = yv.astype(jnp.int32)                                # (TILE_B, 1)
    s = jnp.sum(jnp.where(lane == cls, scores, 0.0),
                axis=-1, keepdims=True) + bm_ref[0, 0]        # (TILE_B, 1)

    out_ref[...] = s                                          # 4 B/row writeback


def prepare_params(params):
    """One-time prep: pad/transpose the tiny weights to lane-friendly layouts.

    Hoisted out of the per-call path. Pad regions are exactly zero so lanes
    10..127 stay zero through every tanh (tanh(0)=0). Matmul operands are
    stored in MATMUL_DTYPE (bf16 by default)."""
    def pad_rowvec(v):                     # (n,) -> (1, PAD) f32
        return jnp.zeros((1, PAD), jnp.float32).at[0, :v.shape[0]].set(
            v.astype(jnp.float32))

    def pad_mat_t(w):                      # (out, in) -> (PAD, PAD) holding W.T
        m = jnp.zeros((PAD, PAD), MATMUL_DTYPE)
        return m.at[:w.shape[1], :w.shape[0]].set(w.T.astype(MATMUL_DTYPE))

    # Fold mine_linear's weight row into every embedding row:
    #   h @ wm.T + bm + sum(emb[y]*h)  ==  (h @ (emb + wm).T)[y] + bm
    emb_aug = params["emb"] + params["wm"][0][None, :]        # (C, HID) f32
    embT = jnp.zeros((PAD, PAD), MATMUL_DTYPE).at[:HID, :NUM_CLASSES].set(
        emb_aug.T.astype(MATMUL_DTYPE))

    return {
        "w1r": pad_rowvec(params["w1"][:, 0]),   # Linear(1,10): row of W1.T (f32, VPU)
        "b1": pad_rowvec(params["b1"]),
        "w2t": pad_mat_t(params["w2"]),
        "b2": pad_rowvec(params["b2"]),
        "w3t": pad_mat_t(params["w3"]),
        "b3": pad_rowvec(params["b3"]),
        "embT": embT,                            # (PAD, PAD): (emb + wm).T padded
        "bm": params["bm"].reshape(1, 1).astype(jnp.float32),   # SMEM scalar
    }


def _round_up(n, m):
    return ((n + m - 1) // m) * m


def _pick_tile(batch):
    """Biggest tile <= TILE_B; keep >= 2 grid steps when the batch allows it
    so ("parallel",) can shard the batch axis across v7x's two TensorCores."""
    tile = min(TILE_B, _round_up(batch, 8))
    if batch >= 512:
        tile = min(tile, _round_up(-(-batch // 2), 8))
    return tile


@jax.jit
def t_gaussian_forward(inp, y, prepped):
    """inp: (B, 1) float, y: (B,) int, prepped: prepare_params(...) -> (B, 1)."""
    B = inp.shape[0]
    tile = _pick_tile(B)
    n_tiles = -(-B // tile)
    B_pad = n_tiles * tile

    # Pack x and y into one operand (class ids are exact in f32): one tiny DMA
    # per grid step instead of two.
    x = inp.astype(jnp.float32).reshape(B, 1)
    yf = y.astype(jnp.float32).reshape(B, 1)
    xy = jnp.concatenate([x, yf], axis=1)                     # (B, 2)
    if B_pad != B:
        # pad rows compute (valid) garbage with class 0 and are sliced off below
        xy = jnp.pad(xy, ((0, B_pad - B), (0, 0)))

    row_spec = lambda i: (i, 0)      # batch-tiled operands
    const_spec = lambda i: (0, 0)    # VMEM-resident weights (never re-fetched)

    out = pl.pallas_call(
        _t_gaussian_kernel,
        out_shape=jax.ShapeDtypeStruct((B_pad, 1), jnp.float32),
        grid=(n_tiles,),
        in_specs=[
            pl.BlockSpec((tile, 2), row_spec),                  # packed (x, y)
            pl.BlockSpec((1, PAD), const_spec),                 # w1 row (W1.T)
            pl.BlockSpec((1, PAD), const_spec),                 # b1
            pl.BlockSpec((PAD, PAD), const_spec),               # W2.T padded (bf16)
            pl.BlockSpec((1, PAD), const_spec),                 # b2
            pl.BlockSpec((PAD, PAD), const_spec),               # W3.T padded (bf16)
            pl.BlockSpec((1, PAD), const_spec),                 # b3
            pl.BlockSpec((PAD, PAD), const_spec),               # (emb + wm).T padded
            pl.BlockSpec(memory_space=pltpu.MemorySpace.SMEM),  # bm scalar
        ],
        out_specs=pl.BlockSpec((tile, 1), row_spec),            # 4 B/row output
        compiler_params=pltpu.CompilerParams(
            dimension_semantics=("parallel",)),
    )(xy, prepped["w1r"], prepped["b1"], prepped["w2t"], prepped["b2"],
      prepped["w3t"], prepped["b3"], prepped["embT"], prepped["bm"])

    return out[:B]


def init_params(key):
    """Deterministic synthetic init matching the module's shapes.
    Linear weights ~ N(0, 0.02) as in __initialize_weights; biases and the
    embedding get small deterministic values."""
    ks = jax.random.split(key, 8)
    return {
        "w1": 0.02 * jax.random.normal(ks[0], (HID, 1), jnp.float32),
        "b1": 0.01 * jax.random.normal(ks[1], (HID,), jnp.float32),
        "w2": 0.02 * jax.random.normal(ks[2], (HID, HID), jnp.float32),
        "b2": 0.01 * jax.random.normal(ks[3], (HID,), jnp.float32),
        "w3": 0.02 * jax.random.normal(ks[4], (HID, HID), jnp.float32),
        "b3": 0.01 * jax.random.normal(ks[5], (HID,), jnp.float32),
        "wm": 0.02 * jax.random.normal(ks[6], (1, HID), jnp.float32),
        "bm": jnp.zeros((1,), jnp.float32),
        "emb": jax.random.normal(ks[7], (NUM_CLASSES, HID), jnp.float32),
    }


def _reference_forward(inp, y, params):
    """Pure-JAX f32 reference of the PyTorch forward (sanity check)."""
    h = jnp.tanh(inp @ params["w1"].T + params["b1"])
    h = jnp.tanh(h @ params["w2"].T + params["b2"])
    h = jnp.tanh(h @ params["w3"].T + params["b3"])
    s = h @ params["wm"].T + params["bm"]
    s = s + jnp.sum(params["emb"][y] * h, axis=1, keepdims=True)
    return s


if __name__ == "__main__":
    key = jax.random.PRNGKey(0)
    k_param, k_x, k_y = jax.random.split(key, 3)

    params = init_params(k_param)
    prepped = prepare_params(params)          # one-time weight padding/fold

    B = 1000                                  # exercises 2-tile grid + tail padding
    inp = jax.random.normal(k_x, (B, 1), jnp.float32)            # 1-D samples
    y = jax.random.randint(k_y, (B,), 0, NUM_CLASSES, jnp.int32)

    out = jax.block_until_ready(t_gaussian_forward(inp, y, prepped))

    ref = _reference_forward(inp, y, params)
    assert out.shape == (B, 1)
    # bf16 matmul weights -> loosened tolerance (f32 reference); set
    # MATMUL_DTYPE = jnp.float32 above to verify at 1e-5.
    assert jnp.allclose(out, ref, atol=5e-3, rtol=2e-2), (out[:4], ref[:4])

    print("KERNEL_OK")
</pallas_src>

<mosaic_0001>
module attributes {stable_mosaic.version = 11 : i64} {
  func.func @_t_gaussian_kernel(%arg0: i32, %arg1: memref<504x2xf32, #tpu.memory_space<vmem>>, %arg2: memref<1x128xf32, #tpu.memory_space<vmem>>, %arg3: memref<1x128xf32, #tpu.memory_space<vmem>>, %arg4: memref<128x128xbf16, #tpu.memory_space<vmem>>, %arg5: memref<1x128xf32, #tpu.memory_space<vmem>>, %arg6: memref<128x128xbf16, #tpu.memory_space<vmem>>, %arg7: memref<1x128xf32, #tpu.memory_space<vmem>>, %arg8: memref<128x128xbf16, #tpu.memory_space<vmem>>, %arg9: memref<1x1xf32, #tpu.memory_space<smem>>, %arg10: memref<504x1xf32, #tpu.memory_space<vmem>>) attributes {dimension_semantics = [#tpu.dimension_semantics<parallel>], iteration_bounds = array<i64: 2>, scalar_prefetch = 0 : i64, scratch_operands = 0 : i64, tpu.core_type = #tpu.core_type<tc>, window_params = [{transform_indices = @transform_0, window_bounds = array<i64: 504, 2>}, {pipeline_mode = #tpu.pipeline_mode<synchronous>, transform_indices = @transform_1, window_bounds = array<i64: 1, 128>}, {pipeline_mode = #tpu.pipeline_mode<synchronous>, transform_indices = @transform_2, window_bounds = array<i64: 1, 128>}, {pipeline_mode = #tpu.pipeline_mode<synchronous>, transform_indices = @transform_3, window_bounds = array<i64: 128, 128>}, {pipeline_mode = #tpu.pipeline_mode<synchronous>, transform_indices = @transform_4, window_bounds = array<i64: 1, 128>}, {pipeline_mode = #tpu.pipeline_mode<synchronous>, transform_indices = @transform_5, window_bounds = array<i64: 128, 128>}, {pipeline_mode = #tpu.pipeline_mode<synchronous>, transform_indices = @transform_6, window_bounds = array<i64: 1, 128>}, {pipeline_mode = #tpu.pipeline_mode<synchronous>, transform_indices = @transform_7, window_bounds = array<i64: 128, 128>}, {transform_indices = @transform_8, window_bounds = array<i64: 1, 1>}, {transform_indices = @transform_9, window_bounds = array<i64: 504, 1>}]} {
    %c0 = arith.constant 0 : index
    %c0_0 = arith.constant 0 : index
    %0 = vector.load %arg1[%c0, %c0_0] : memref<504x2xf32, #tpu.memory_space<vmem>>, vector<504x2xf32>
    %1 = vector.extract_strided_slice %0 {offsets = [0, 0], sizes = [504, 1], strides = [1, 1]} : vector<504x2xf32> to vector<504x1xf32>
    %2 = vector.extract_strided_slice %0 {offsets = [0, 1], sizes = [504, 1], strides = [1, 1]} : vector<504x2xf32> to vector<504x1xf32>
    %c0_1 = arith.constant 0 : index
    %c0_2 = arith.constant 0 : index
    %3 = vector.load %arg2[%c0_1, %c0_2] : memref<1x128xf32, #tpu.memory_space<vmem>>, vector<1x128xf32>
    %4 = vector.broadcast %1 : vector<504x1xf32> to vector<504x128xf32>
    %5 = vector.broadcast %3 : vector<1x128xf32> to vector<504x128xf32>
    %6 = arith.mulf %4, %5 : vector<504x128xf32>
    %c0_3 = arith.constant 0 : index
    %c0_4 = arith.constant 0 : index
    %7 = vector.load %arg3[%c0_3, %c0_4] : memref<1x128xf32, #tpu.memory_space<vmem>>, vector<1x128xf32>
    %8 = vector.broadcast %7 : vector<1x128xf32> to vector<504x128xf32>
    %9 = arith.addf %6, %8 : vector<504x128xf32>
    %10 = math.tanh %9 : vector<504x128xf32>
    %11 = arith.truncf %10 : vector<504x128xf32> to vector<504x128xbf16>
    %c0_5 = arith.constant 0 : index
    %c0_6 = arith.constant 0 : index
    %12 = vector.load %arg4[%c0_5, %c0_6] : memref<128x128xbf16, #tpu.memory_space<vmem>>, vector<128x128xbf16>
    %cst = arith.constant dense<0.000000e+00> : vector<504x128xf32>
    %13 = tpu.matmul %11, %12, %cst {dimension_numbers = #tpu.dot_dimension_numbers<[1], [0], [0], [1], [0, 0, 1, 1], [], []>} : vector<504x128xbf16>, vector<128x128xbf16>, vector<504x128xf32> -> vector<504x128xf32>
    %c0_7 = arith.constant 0 : index
    %c0_8 = arith.constant 0 : index
    %14 = vector.load %arg5[%c0_7, %c0_8] : memref<1x128xf32, #tpu.memory_space<vmem>>, vector<1x128xf32>
    %15 = vector.broadcast %14 : vector<1x128xf32> to vector<504x128xf32>
    %16 = arith.addf %13, %15 : vector<504x128xf32>
    %17 = math.tanh %16 : vector<504x128xf32>
    %18 = arith.truncf %17 : vector<504x128xf32> to vector<504x128xbf16>
    %c0_9 = arith.constant 0 : index
    %c0_10 = arith.constant 0 : index
    %19 = vector.load %arg6[%c0_9, %c0_10] : memref<128x128xbf16, #tpu.memory_space<vmem>>, vector<128x128xbf16>
    %cst_11 = arith.constant dense<0.000000e+00> : vector<504x128xf32>
    %20 = tpu.matmul %18, %19, %cst_11 {dimension_numbers = #tpu.dot_dimension_numbers<[1], [0], [0], [1], [0, 0, 1, 1], [], []>} : vector<504x128xbf16>, vector<128x128xbf16>, vector<504x128xf32> -> vector<504x128xf32>
    %c0_12 = arith.constant 0 : index
    %c0_13 = arith.constant 0 : index
    %21 = vector.load %arg7[%c0_12, %c0_13] : memref<1x128xf32, #tpu.memory_space<vmem>>, vector<1x128xf32>
    %22 = vector.broadcast %21 : vector<1x128xf32> to vector<504x128xf32>
    %23 = arith.addf %20, %22 : vector<504x128xf32>
    %24 = math.tanh %23 : vector<504x128xf32>
    %25 = arith.truncf %24 : vector<504x128xf32> to vector<504x128xbf16>
    %c0_14 = arith.constant 0 : index
    %c0_15 = arith.constant 0 : index
    %26 = vector.load %arg8[%c0_14, %c0_15] : memref<128x128xbf16, #tpu.memory_space<vmem>>, vector<128x128xbf16>
    %cst_16 = arith.constant dense<0.000000e+00> : vector<504x128xf32>
    %27 = tpu.matmul %25, %26, %cst_16 {dimension_numbers = #tpu.dot_dimension_numbers<[1], [0], [0], [1], [0, 0, 1, 1], [], []>} : vector<504x128xbf16>, vector<128x128xbf16>, vector<504x128xf32> -> vector<504x128xf32>
    %28 = tpu.iota {dimensions = array<i32: 1>} : vector<504x128xi32>
    %29 = arith.fptosi %2 : vector<504x1xf32> to vector<504x1xi32>
    %30 = vector.broadcast %29 : vector<504x1xi32> to vector<504x128xi32>
    %31 = arith.cmpi eq, %28, %30 : vector<504x128xi32>
    %cst_17 = arith.constant 0.000000e+00 : f32
    %32 = vector.broadcast %cst_17 : f32 to vector<504x128xf32>
    %33 = arith.select %31, %27, %32 : vector<504x128xi1>, vector<504x128xf32>
    %cst_18 = arith.constant dense<0.000000e+00> : vector<504xf32>
    %34 = vector.multi_reduction <add>, %33, %cst_18 [1] : vector<504x128xf32> to vector<504xf32>
    %35 = vector.shape_cast %34 : vector<504xf32> to vector<504x1xf32>
    %c0_19 = arith.constant 0 : index
    %c0_20 = arith.constant 0 : index
    %36 = memref.load %arg9[%c0_19, %c0_20] : memref<1x1xf32, #tpu.memory_space<smem>>
    %37 = vector.broadcast %36 : f32 to vector<504x1xf32>
    %38 = arith.addf %35, %37 : vector<504x1xf32>
    %c0_21 = arith.constant 0 : index
    %c0_22 = arith.constant 0 : index
    %39 = vector.load %arg10[%c0_21, %c0_22] : memref<504x1xf32, #tpu.memory_space<vmem>>, vector<504x1xf32>
    tpu.vector_store %arg10[%c0_21, %c0_22], %38 {strides = array<i32>} : memref<504x1xf32, #tpu.memory_space<vmem>>, vector<504x1xf32>,
    return
  }
  func.func @transform_0(%arg0: i32) -> (i32, i32) {
    %c0_i32 = arith.constant 0 : i32
    %c0_i32_0 = arith.constant 0 : i32
    return %arg0, %c0_i32 : i32, i32
  }
  func.func @transform_1(%arg0: i32) -> (i32, i32) {
    %c0_i32 = arith.constant 0 : i32
    %c0_i32_0 = arith.constant 0 : i32
    %c0_i32_1 = arith.constant 0 : i32
    return %c0_i32, %c0_i32_0 : i32, i32
  }
  func.func @transform_2(%arg0: i32) -> (i32, i32) {
    %c0_i32 = arith.constant 0 : i32
    %c0_i32_0 = arith.constant 0 : i32
    %c0_i32_1 = arith.constant 0 : i32
    return %c0_i32, %c0_i32_0 : i32, i32
  }
  func.func @transform_3(%arg0: i32) -> (i32, i32) {
    %c0_i32 = arith.constant 0 : i32
    %c0_i32_0 = arith.constant 0 : i32
    %c0_i32_1 = arith.constant 0 : i32
    return %c0_i32, %c0_i32_0 : i32, i32
  }
  func.func @transform_4(%arg0: i32) -> (i32, i32) {
    %c0_i32 = arith.constant 0 : i32
    %c0_i32_0 = arith.constant 0 : i32
    %c0_i32_1 = arith.constant 0 : i32
    return %c0_i32, %c0_i32_0 : i32, i32
  }
  func.func @transform_5(%arg0: i32) -> (i32, i32) {
    %c0_i32 = arith.constant 0 : i32
    %c0_i32_0 = arith.constant 0 : i32
    %c0_i32_1 = arith.constant 0 : i32
    return %c0_i32, %c0_i32_0 : i32, i32
  }
  func.func @transform_6(%arg0: i32) -> (i32, i32) {
    %c0_i32 = arith.constant 0 : i32
    %c0_i32_0 = arith.constant 0 : i32
    %c0_i32_1 = arith.constant 0 : i32
    return %c0_i32, %c0_i32_0 : i32, i32
  }
  func.func @transform_7(%arg0: i32) -> (i32, i32) {
    %c0_i32 = arith.constant 0 : i32
    %c0_i32_0 = arith.constant 0 : i32
    %c0_i32_1 = arith.constant 0 : i32
    return %c0_i32, %c0_i32_0 : i32, i32
  }
  func.func @transform_8(%arg0: i32) -> (i32, i32) {
    %c0_i32 = arith.constant 0 : i32
    %c0_i32_0 = arith.constant 0 : i32
    %c0_i32_1 = arith.constant 0 : i32
    return %c0_i32, %c0_i32_0 : i32, i32
  }
  func.func @transform_9(%arg0: i32) -> (i32, i32) {
    %c0_i32 = arith.constant 0 : i32
    %c0_i32_0 = arith.constant 0 : i32
    return %arg0, %c0_i32 : i32, i32
  }
}

</mosaic_0001>

<bundles_post_ra>
// kernel: t_gaussian_forward.1
= control target key start
LH: loop header
LB: loop body
LE: loop exit
PB: predicated region body
PF: predicated region fallthrough
CT: control target
= control target key end

     0   :  { %s3983_s11 = smov 0   ;;  %s4831_s0 = inlined_call_operand.vmem [shape: f32[1008,2], index: 0, kind: input, shape index: {}]   ;;  %s4832_s1 = inlined_call_operand.vmem [shape: f32[1,128], index: 1, kind: input, shape index: {}]   ;;  %s4833_s2 = inlined_call_operand.vmem [shape: f32[1,128], index: 2, kind: input, shape index: {}]   ;;  %s4834_s3 = inlined_call_operand.vmem [shape: bf16[128,128], index: 3, kind: input, shape index: {}]   ;;  %s4835_s4 = inlined_call_operand.vmem [shape: f32[1,128], index: 4, kind: input, shape index: {}]   ;;  %s4836_s5 = inlined_call_operand.vmem [shape: bf16[128,128], index: 5, kind: input, shape index: {}]   ;;  %s4837_s6 = inlined_call_operand.vmem [shape: f32[1,128], index: 6, kind: input, shape index: {}]   ;;  %s4838_s7 = inlined_call_operand.vmem [shape: bf16[128,128], index: 7, kind: input, shape index: {}]   ;;  %s4839_s8 = inlined_call_operand.<no memory space> [shape: f32[1,1], index: 8, kind: input, shape index: {}]   ;;  %s4840_s9 = inlined_call_operand.vmem [shape: f32[1008,1], index: 9, kind: output, shape index: {}]  }
   0x1   :  { %14 = sst [smem:[#allocation2]] %s4839_s8 }
   0x2 LB: > { %s2902_s12 = sadd.s32 4294967295, %s3926_s11   ;;  %p2906_p0 = scmp.ge.s32.totalorder %s3926_s11, 1  ;;  %s3926_s11 = sphi %s3983_s11, %s20_s11  }
   0x3   : > { %p289_p1 = scmp.lt.s32.totalorder %s3926_s11, 3 }
   0x5   : > { %p290_p2 = pnand %p2906_p0, %p289_p1 }
   0x6   : > { %s325_s13 = smul.u32 (!%p290_p2), 63, %s2902_s12  ;;  %v3928_v0 = vmov (!%p290_p2), 0   ;;  %v3455_v1 = vld [vmem:[%s4834_s3] sm:$0xff] (!%p290_p2)   ;;  %v3456_v2 = vld [vmem:[%s4834_s3 + $0x8] sm:$0xff] (!%p290_p2)   ;;  %v3457_v3 = vld [vmem:[%s4834_s3 + $0x10] sm:$0xff] (!%p290_p2)  }
   0x7   : > { %293 = sbr.rel (%p290_p2) target bundleno = 1114 (0x45a), region = 56  ;;  %3452 = vset.pattern.permute.xlu1 (!%p290_p2), %v3928_v0  ;;  %3451 = vset.pattern.permute.xlu0 (!%p290_p2), %v3928_v0  ;;  %v3458_v17 = vld [vmem:[%s4834_s3 + $0x18] sm:$0xff] (!%p290_p2)   ;;  %v3459_v19 = vld [vmem:[%s4834_s3 + $0x20] sm:$0xff] (!%p290_p2)   ;;  %v3460_v22 = vld [vmem:[%s4834_s3 + $0x28] sm:$0xff] (!%p290_p2)  }
   0x8   : > { %p326_p3 = scmp.lt.s32.totalorder (!%p290_p2), %s325_s13, 125  ;;  %3059 = vmatprep.subr.bf16.mxu0 (!%p290_p2), %v3455_v1  ;;  %3299 = vmatprep.subr.bf16.mxu1 (!%p290_p2), %v3455_v1  ;;  %v3461_v25 = vld [vmem:[%s4834_s3 + $0x30] sm:$0xff] (!%p290_p2)   ;;  %v3462_v28 = vld [vmem:[%s4834_s3 + $0x38] sm:$0xff] (!%p290_p2)  }
   0x9   : > { %3060 = vmatpush3.bf16.msra.mxu0 (!%p290_p2), %v3455_v1  ;;  %3307 = vmatpush3.bf16.msra.mxu1 (!%p290_p2), %v3455_v1 }
   0xa   : > { %3061 = vmatprep.subr.bf16.mxu0 (!%p290_p2), %v3456_v2  ;;  %3300 = vmatprep.subr.bf16.mxu1 (!%p290_p2), %v3456_v2 }
   0xd   : > { %3062 = vmatpush3.bf16.msra.mxu0 (!%p290_p2), %v3456_v2  ;;  %3308 = vmatpush3.bf16.msra.mxu1 (!%p290_p2), %v3456_v2 }
   0xe   : > { %s4842_s13 = smov (!%p326_p3, %s325_s13), 125  ;;  %3063 = vmatprep.subr.bf16.mxu0 %v3457_v3  ;;  %3301 = vmatprep.subr.bf16.mxu1 %v3457_v3 }
   0xf   : > { %s2907_s17 = sshll.u32 %s4842_s13, 3 }
  0x10   : > { %s4008_s22 = scalar_lea.vmem %s4831_s0, %s2907_s17  ;;  %s4637_s20 = scalar_lea.vmem %s4840_s9, %s2907_s17 }
  0x11   : > { %v340_v4 = vld [vmem:[%s4008_s22 + $0x10] sm:$0xff]  ;;  %v338_v5 = vld [vmem:[%s4008_s22] sm:$0xff]  ;;  %v341_v6 = vld [vmem:[%s4008_s22 + $0x18] sm:$0xff]  ;;  %3064 = vmatpush3.bf16.msra.mxu0 %v3457_v3  ;;  %3309 = vmatpush3.bf16.msra.mxu1 %v3457_v3 }
  0x12   : > { %414 = vperm.xlu1 %3452, %v340_v4   ;;  %404 = vperm.xlu0 %3451, %v338_v5   ;;  %v339_v7 = vld [vmem:[%s4008_s22 + $0x8] sm:$0xff]  ;;  %v342_v9 = vld [vmem:[%s4008_s22 + $0x20] sm:$0xff]  ;;  %v345_v10 = vld [vmem:[%s4008_s22 + $0x38] sm:$0xff] }
  0x13   : > { %v343_v8 = vld [vmem:[%s4008_s22 + $0x28] sm:$0xff]  ;;  %v344_v11 = vld [vmem:[%s4008_s22 + $0x30] sm:$0xff]  ;;  %v346_v13 = vld [vmem:[%s4008_s22 + $0x40] sm:$0xff]  ;;  %3065 = vmatprep.subr.bf16.mxu0 %v3458_v17  ;;  %3302 = vmatprep.subr.bf16.mxu1 %v3458_v17 }
  0x14   : > { %v347_v12 = vld [vmem:[%s4008_s22 + $0x48] sm:$0xff]  ;;  %v349_v14 = vld [vmem:[%s4008_s22 + $0x58] sm:$0xff]  ;;  %v348_v15 = vld [vmem:[%s4008_s22 + $0x50] sm:$0xff] }
  0x15   : > { %v351_v16 = vld [vmem:[%s4008_s22 + $0x68] sm:$0xff]  ;;  %v350_v18 = vld [vmem:[%s4008_s22 + $0x60] sm:$0xff]  ;;  %v353_v20 = vld [vmem:[%s4008_s22 + $0x78] sm:$0xff]  ;;  %3066 = vmatpush3.bf16.msra.mxu0 %v3458_v17  ;;  %3310 = vmatpush3.bf16.msra.mxu1 %v3458_v17 }
  0x16   : > { %419 = vperm.xlu1 %3452, %v341_v6   ;;  %409 = vperm.xlu0 %3451, %v339_v7   ;;  %v352_v21 = vld [vmem:[%s4008_s22 + $0x70] sm:$0xff]  ;;  %v355_v23 = vld [vmem:[%s4008_s22 + $0x88] sm:$0xff]  ;;  %v354_v24 = vld [vmem:[%s4008_s22 + $0x80] sm:$0xff] }
  0x17   : > { %3067 = vmatprep.subr.bf16.mxu0 %v3459_v19  ;;  %3303 = vmatprep.subr.bf16.mxu1 %v3459_v19  ;;  %v357_v26 = vld [vmem:[%s4008_s22 + $0x98] sm:$0xff]  ;;  %v356_v27 = vld [vmem:[%s4008_s22 + $0x90] sm:$0xff]  ;;  %v359_v29 = vld [vmem:[%s4008_s22 + $0xa8] sm:$0xff] }
  0x18   : > { %v358_v30 = vld [vmem:[%s4008_s22 + $0xa0] sm:$0xff]  ;;  %v361_v31 = vld [vmem:[%s4008_s22 + $0xb8] sm:$0xff]  ;;  %v360_v32 = vld [vmem:[%s4008_s22 + $0xb0] sm:$0xff] }
  0x19   : > { %3068 = vmatpush3.bf16.msra.mxu0 %v3459_v19  ;;  %3311 = vmatpush3.bf16.msra.mxu1 %v3459_v19  ;;  %v363_v33 = vld [vmem:[%s4008_s22 + $0xc8] sm:$0xff]  ;;  %v362_v34 = vld [vmem:[%s4008_s22 + $0xc0] sm:$0xff]  ;;  %v365_v35 = vld [vmem:[%s4008_s22 + $0xd8] sm:$0xff] }
  0x1a   : > { %429 = vperm.xlu1 %3452, %v343_v8   ;;  %424 = vperm.xlu0 %3451, %v342_v9   ;;  %v364_v36 = vld [vmem:[%s4008_s22 + $0xd0] sm:$0xff]  ;;  %v367_v37 = vld [vmem:[%s4008_s22 + $0xe8] sm:$0xff]  ;;  %v366_v38 = vld [vmem:[%s4008_s22 + $0xe0] sm:$0xff] }
  0x1b   : > { %3069 = vmatprep.subr.bf16.mxu0 %v3460_v22  ;;  %3304 = vmatprep.subr.bf16.mxu1 %v3460_v22  ;;  %v369_v39 = vld [vmem:[%s4008_s22 + $0xf8] sm:$0xff]  ;;  %v368_v40 = vld [vmem:[%s4008_s22 + $0xf0] sm:$0xff]  ;;  %v371_v41 = vld [vmem:[%s4008_s22 + $0x108] sm:$0xff] }
  0x1c   : > { %v370_v42 = vld [vmem:[%s4008_s22 + $0x100] sm:$0xff]  ;;  %v373_v43 = vld [vmem:[%s4008_s22 + $0x118] sm:$0xff]  ;;  %v372_v44 = vld [vmem:[%s4008_s22 + $0x110] sm:$0xff] }
  0x1d   : > { %3070 = vmatpush3.bf16.msra.mxu0 %v3460_v22  ;;  %3312 = vmatpush3.bf16.msra.mxu1 %v3460_v22  ;;  %v375_v45 = vld [vmem:[%s4008_s22 + $0x128] sm:$0xff]  ;;  %v374_v46 = vld [vmem:[%s4008_s22 + $0x120] sm:$0xff]  ;;  %v377_v47 = vld [vmem:[%s4008_s22 + $0x138] sm:$0xff] }
  0x1e   : > { %439 = vperm.xlu1 %3452, %v345_v10   ;;  %434 = vperm.xlu0 %3451, %v344_v11   ;;  %v376_v48 = vld [vmem:[%s4008_s22 + $0x130] sm:$0xff]  ;;  %v379_v49 = vld [vmem:[%s4008_s22 + $0x148] sm:$0xff]  ;;  %v378_v50 = vld [vmem:[%s4008_s22 + $0x140] sm:$0xff] }
  0x1f   : > { %3071 = vmatprep.subr.bf16.mxu0 %v3461_v25  ;;  %3305 = vmatprep.subr.bf16.mxu1 %v3461_v25  ;;  %v381_v51 = vld [vmem:[%s4008_s22 + $0x158] sm:$0xff]  ;;  %v380_v52 = vld [vmem:[%s4008_s22 + $0x150] sm:$0xff]  ;;  %v383_v53 = vld [vmem:[%s4008_s22 + $0x168] sm:$0xff] }
  0x20   : > { %v382_v54 = vld [vmem:[%s4008_s22 + $0x160] sm:$0xff]  ;;  %v385_v55 = vld [vmem:[%s4008_s22 + $0x178] sm:$0xff]  ;;  %v384_v56 = vld [vmem:[%s4008_s22 + $0x170] sm:$0xff] }
  0x21   : > { %3072 = vmatpush3.bf16.msra.mxu0 %v3461_v25  ;;  %3313 = vmatpush3.bf16.msra.mxu1 %v3461_v25  ;;  %v387_v57 = vld [vmem:[%s4008_s22 + $0x188] sm:$0xff]  ;;  %v386_v58 = vld [vmem:[%s4008_s22 + $0x180] sm:$0xff]  ;;  %v389_v59 = vld [vmem:[%s4008_s22 + $0x198] sm:$0xff] }
  0x22   : > { %449 = vperm.xlu1 %3452, %v347_v12   ;;  %444 = vperm.xlu0 %3451, %v346_v13   ;;  %v388_v60 = vld [vmem:[%s4008_s22 + $0x190] sm:$0xff]  ;;  %v391_v61 = vld [vmem:[%s4008_s22 + $0x1a8] sm:$0xff]  ;;  %v390_v62 = vld [vmem:[%s4008_s22 + $0x1a0] sm:$0xff] }
  0x23   : > { %3073 = vmatprep.subr.bf16.mxu0 %v3462_v28  ;;  %3306 = vmatprep.subr.bf16.mxu1 %v3462_v28  ;;  %v393_v63 = vld [vmem:[%s4008_s22 + $0x1b8] sm:$0xff]  ;;  %v392_v0 = vld [vmem:[%s4008_s22 + $0x1b0] sm:$0xff]  ;;  %v395_v1 = vld [vmem:[%s4008_s22 + $0x1c8] sm:$0xff] }
  0x24   : > { %v394_v2 = vld [vmem:[%s4008_s22 + $0x1c0] sm:$0xff]  ;;  %v397_v3 = vld [vmem:[%s4008_s22 + $0x1d8] sm:$0xff]  ;;  %v396_v4 = vld [vmem:[%s4008_s22 + $0x1d0] sm:$0xff] }
  0x25   : > { %3074 = vmatpush3.bf16.msra.mxu0 %v3462_v28  ;;  %3314 = vmatpush3.bf16.msra.mxu1 %v3462_v28  ;;  %v399_v5 = vld [vmem:[%s4008_s22 + $0x1e8] sm:$0xff]  ;;  %v398_v6 = vld [vmem:[%s4008_s22 + $0x1e0] sm:$0xff]  ;;  %v400_v7 = vld [vmem:[%s4008_s22 + $0x1f0] sm:$0xff] }
  0x26   : > { %459 = vperm.xlu1 %3452, %v349_v14   ;;  %454 = vperm.xlu0 %3451, %v348_v15   ;;  %v4091_v8 = vld [vmem:[%s4832_s1] ss:$0 sm:$0xff] }
  0x27   : > { %v4096_v9 = vld [vmem:[%s4833_s2] ss:$0 sm:$0xff] }
  0x2a   : > { %469 = vperm.xlu1 %3452, %v351_v16   ;;  %464 = vperm.xlu0 %3451, %v350_v18  }
  0x2e   : > { %479 = vperm.xlu1 %3452, %v353_v20   ;;  %474 = vperm.xlu0 %3451, %v352_v21  }
  0x32   : > { %489 = vperm.xlu1 %3452, %v355_v23   ;;  %484 = vperm.xlu0 %3451, %v354_v24  }
  0x36   : > { %499 = vperm.xlu1 %3452, %v357_v26   ;;  %494 = vperm.xlu0 %3451, %v356_v27  }
  0x3a   : > { %509 = vperm.xlu1 %3452, %v359_v29   ;;  %504 = vperm.xlu0 %3451, %v358_v30  }
  0x3e   : > { %519 = vperm.xlu1 %3452, %v361_v31   ;;  %514 = vperm.xlu0 %3451, %v360_v32  }
  0x42   : > { %529 = vperm.xlu1 %3452, %v363_v33   ;;  %524 = vperm.xlu0 %3451, %v362_v34   ;;  %v4117_v34 = vld [vmem:[%s4836_s5] sm:$0xff]  }
  0x43   : > { %3139 = vmatprep.subr.bf16.mxu1 %v4117_v34 }
  0x46   : > { %539 = vperm.xlu1 %3452, %v365_v35   ;;  %534 = vperm.xlu0 %3451, %v364_v36  }
  0x4a   : > { %549 = vperm.xlu1 %3452, %v367_v37   ;;  %544 = vperm.xlu0 %3451, %v366_v38  }
  0x4e   : > { %559 = vperm.xlu1 %3452, %v369_v39   ;;  %554 = vperm.xlu0 %3451, %v368_v40  }
  0x52   : > { %569 = vperm.xlu1 %3452, %v371_v41   ;;  %564 = vperm.xlu0 %3451, %v370_v42  }
  0x56   : > { %579 = vperm.xlu1 %3452, %v373_v43   ;;  %574 = vperm.xlu0 %3451, %v372_v44  }
  0x5a   : > { %589 = vperm.xlu1 %3452, %v375_v45   ;;  %584 = vperm.xlu0 %3451, %v374_v46  }
  0x5e   : > { %599 = vperm.xlu1 %3452, %v377_v47   ;;  %594 = vperm.xlu0 %3451, %v376_v48  }
  0x62   : > { %609 = vperm.xlu1 %3452, %v379_v49   ;;  %604 = vperm.xlu0 %3451, %v378_v50  }
  0x66   : > { %619 = vperm.xlu1 %3452, %v381_v51   ;;  %614 = vperm.xlu0 %3451, %v380_v52  }
  0x6a   : > { %629 = vperm.xlu1 %3452, %v383_v53   ;;  %624 = vperm.xlu0 %3451, %v382_v54  }
  0x6e   : > { %639 = vperm.xlu1 %3452, %v385_v55   ;;  %634 = vperm.xlu0 %3451, %v384_v56  }
  0x72   : > { %649 = vperm.xlu1 %3452, %v387_v57   ;;  %644 = vperm.xlu0 %3451, %v386_v58  }
  0x76   : > { %659 = vperm.xlu1 %3452, %v389_v59   ;;  %654 = vperm.xlu0 %3451, %v388_v60  }
  0x7a   : > { %669 = vperm.xlu1 %3452, %v391_v61   ;;  %664 = vperm.xlu0 %3451, %v390_v62  }
  0x7e   : > { %679 = vperm.xlu1 %3452, %v393_v63   ;;  %674 = vperm.xlu0 %3451, %v392_v0  }
  0x82   : > { %689 = vperm.xlu1 %3452, %v395_v1   ;;  %684 = vperm.xlu0 %3451, %v394_v2  }
  0x86   : > { %699 = vperm.xlu1 %3452, %v397_v3   ;;  %694 = vperm.xlu0 %3451, %v396_v4  }
  0x8a   : > { %709 = vperm.xlu1 %3452, %v399_v5   ;;  %704 = vperm.xlu0 %3451, %v398_v6  }
  0x8e   : > { %714 = vperm.xlu0 %3451, %v400_v7  }
  0x91   : > { %v415_v10 = vpop.permute.xlu1 %414  ;;  %v405_v11 = vpop.permute.xlu0 %404 }
  0x92   : > { %v725_v12 = vmul.f32 %v4091_v8, %v415_v10  ;;  %v723_v13 = vmul.f32 %v4091_v8, %v405_v11 }
  0x94   : > { %v795_v14 = vadd.f32 %v4096_v9, %v725_v12  ;;  %v793_v15 = vadd.f32 %v4096_v9, %v723_v13 }
  0x95   : > { %v420_v16 = vpop.permute.xlu1 %419  ;;  %v410_v17 = vpop.permute.xlu0 %409 }
  0x96   : > { %v726_v18 = vmul.f32 %v4091_v8, %v420_v16  ;;  %v724_v19 = vmul.f32 %v4091_v8, %v410_v17  ;;  %3479 = vtanh.f32 %v795_v14 }
  0x97   : > { %3481 = vtanh.f32 %v793_v15 }
  0x98   : > { %v796_v20 = vadd.f32 %v4096_v9, %v726_v18  ;;  %v794_v21 = vadd.f32 %v4096_v9, %v724_v19 }
  0x99   : > { %v430_v22 = vpop.permute.xlu1 %429  ;;  %v425_v23 = vpop.permute.xlu0 %424 }
  0x9a   : > { %3483 = vtanh.f32 %v796_v20  ;;  %v728_v24 = vmul.f32 %v4091_v8, %v430_v22  ;;  %v727_v25 = vmul.f32 %v4091_v8, %v425_v23 }
  0x9b   : > { %3485 = vtanh.f32 %v794_v21 }
  0x9c   : > { %v798_v26 = vadd.f32 %v4096_v9, %v728_v24  ;;  %v797_v27 = vadd.f32 %v4096_v9, %v727_v25 }
  0x9d   : > { %v440_v28 = vpop.permute.xlu1 %439  ;;  %v435_v29 = vpop.permute.xlu0 %434 }
  0x9e   : > { %3487 = vtanh.f32 %v798_v26  ;;  %v730_v30 = vmul.f32 %v4091_v8, %v440_v28  ;;  %v729_v31 = vmul.f32 %v4091_v8, %v435_v29 }
  0x9f   : > { %3489 = vtanh.f32 %v797_v27 }
  0xa0   : > { %v800_v32 = vadd.f32 %v4096_v9, %v730_v30  ;;  %v799_v33 = vadd.f32 %v4096_v9, %v729_v31  ;;  %v3480_v37 = vpop.eup %3479 }
  0xa1   : > { %v450_v35 = vpop.permute.xlu1 %449  ;;  %v445_v36 = vpop.permute.xlu0 %444 }
  0xa2   : > { %3491 = vtanh.f32 %v800_v32  ;;  %v732_v38 = vmul.f32 %v4091_v8, %v450_v35  ;;  %v731_v39 = vmul.f32 %v4091_v8, %v445_v36  ;;  %v3482_v40 = vpop.eup %3481 }
  0xa3   : > { %3493 = vtanh.f32 %v799_v33 }
  0xa4   : > { %v3484_v41 = vpop.eup %3483  ;;  %v802_v42 = vadd.f32 %v4096_v9, %v732_v38  ;;  %v801_v43 = vadd.f32 %v4096_v9, %v731_v39 }
  0xa5   : > { %v3486_v44 = vpop.eup %3485  ;;  %v460_v45 = vpop.permute.xlu1 %459  ;;  %v920_v47 = vpack.c.bf16 %v3484_v41, %v3480_v37 }
  0xa6   : > { %v455_v46 = vpop.permute.xlu0 %454  ;;  %3495 = vtanh.f32 %v802_v42  ;;  %v734_v48 = vmul.f32 %v4091_v8, %v460_v45  ;;  %v919_v50 = vpack.c.bf16 %v3486_v44, %v3482_v40 }
  0xa7   : > { %v733_v49 = vmul.f32 %v4091_v8, %v455_v46  ;;  %3497 = vtanh.f32 %v801_v43 }
  0xa8   : > { %v3488_v51 = vpop.eup %3487  ;;  %v804_v52 = vadd.f32 %v4096_v9, %v734_v48  ;;  %3075 = vmatprep.mubr.bf16.mxu0 %v919_v50 }
  0xa9   : > { %v803_v53 = vadd.f32 %v4096_v9, %v733_v49  ;;  %v3490_v54 = vpop.eup %3489  ;;  %3076 = vmatmul.mubr.bf16.vlgmr.msra.gmra.mrb[0].mxu0 %v920_v47  ;;  %v470_v55 = vpop.permute.xlu1 %469 }
  0xaa   : > { %v465_v56 = vpop.permute.xlu0 %464  ;;  %3499 = vtanh.f32 %v804_v52  ;;  %v736_v57 = vmul.f32 %v4091_v8, %v470_v55  ;;  %v921_v59 = vpack.c.bf16 %v3488_v51, %v3490_v54 }
  0xab   : > { %v735_v58 = vmul.f32 %v4091_v8, %v465_v56  ;;  %3501 = vtanh.f32 %v803_v53 }
  0xac   : > { %v3492_v60 = vpop.eup %3491  ;;  %v806_v61 = vadd.f32 %v4096_v9, %v736_v57  ;;  %3079 = vmatprep.mubr.bf16.mxu0 %v921_v59 }
  0xad   : > { %v805_v62 = vadd.f32 %v4096_v9, %v735_v58  ;;  %v3494_v63 = vpop.eup %3493  ;;  %v480_v0 = vpop.permute.xlu1 %479 }
  0xae   : > { %v475_v1 = vpop.permute.xlu0 %474  ;;  %3503 = vtanh.f32 %v806_v61  ;;  %v738_v2 = vmul.f32 %v4091_v8, %v480_v0  ;;  %v922_v4 = vpack.c.bf16 %v3492_v60, %v3494_v63 }
  0xaf   : > { %v737_v3 = vmul.f32 %v4091_v8, %v475_v1  ;;  %3505 = vtanh.f32 %v805_v62 }
  0xb0   : > { %v3496_v5 = vpop.eup %3495  ;;  %v808_v6 = vadd.f32 %v4096_v9, %v738_v2 }
  0xb1   : > { %v807_v7 = vadd.f32 %v4096_v9, %v737_v3  ;;  %v3498_v10 = vpop.eup %3497  ;;  %3080 = vmatmul.mubr.bf16.gmra.mrb[4].mxu0 %v922_v4  ;;  %v490_v11 = vpop.permute.xlu1 %489 }
  0xb2   : > { %v485_v12 = vpop.permute.xlu0 %484  ;;  %3507 = vtanh.f32 %v808_v6  ;;  %v740_v13 = vmul.f32 %v4091_v8, %v490_v11  ;;  %v923_v15 = vpack.c.bf16 %v3496_v5, %v3498_v10 }
  0xb3   : > { %v739_v14 = vmul.f32 %v4091_v8, %v485_v12  ;;  %3509 = vtanh.f32 %v807_v7 }
  0xb4   : > { %v3500_v16 = vpop.eup %3499  ;;  %v810_v17 = vadd.f32 %v4096_v9, %v740_v13  ;;  %3083 = vmatprep.mubr.bf16.mxu0 %v923_v15 }
  0xb5   : > { %v809_v18 = vadd.f32 %v4096_v9, %v739_v14  ;;  %v3502_v19 = vpop.eup %3501  ;;  %v500_v20 = vpop.permute.xlu1 %499 }
  0xb6   : > { %v495_v21 = vpop.permute.xlu0 %494  ;;  %3511 = vtanh.f32 %v810_v17  ;;  %v742_v22 = vmul.f32 %v4091_v8, %v500_v20  ;;  %v924_v24 = vpack.c.bf16 %v3500_v16, %v3502_v19 }
  0xb7   : > { %v741_v23 = vmul.f32 %v4091_v8, %v495_v21  ;;  %3513 = vtanh.f32 %v809_v18 }
  0xb8   : > { %v3504_v25 = vpop.eup %3503  ;;  %v812_v26 = vadd.f32 %v4096_v9, %v742_v22 }
  0xb9   : > { %v811_v27 = vadd.f32 %v4096_v9, %v741_v23  ;;  %v3506_v28 = vpop.eup %3505  ;;  %3084 = vmatmul.mubr.bf16.gmra.mrb[8].mxu0 %v924_v24  ;;  %v510_v29 = vpop.permute.xlu1 %509 }
  0xba   : > { %v505_v30 = vpop.permute.xlu0 %504  ;;  %3515 = vtanh.f32 %v812_v26  ;;  %v744_v31 = vmul.f32 %v4091_v8, %v510_v29  ;;  %v925_v33 = vpack.c.bf16 %v3504_v25, %v3506_v28 }
  0xbb   : > { %v743_v32 = vmul.f32 %v4091_v8, %v505_v30  ;;  %3517 = vtanh.f32 %v811_v27 }
  0xbc   : > { %v3508_v35 = vpop.eup %3507  ;;  %v814_v36 = vadd.f32 %v4096_v9, %v744_v31  ;;  %3087 = vmatprep.mubr.bf16.mxu0 %v925_v33 }
  0xbd   : > { %v813_v37 = vadd.f32 %v4096_v9, %v743_v32  ;;  %v3510_v38 = vpop.eup %3509  ;;  %v520_v39 = vpop.permute.xlu1 %519 }
  0xbe   : > { %v515_v40 = vpop.permute.xlu0 %514  ;;  %3519 = vtanh.f32 %v814_v36  ;;  %v746_v41 = vmul.f32 %v4091_v8, %v520_v39  ;;  %v926_v43 = vpack.c.bf16 %v3508_v35, %v3510_v38 }
  0xbf   : > { %v745_v42 = vmul.f32 %v4091_v8, %v515_v40  ;;  %3521 = vtanh.f32 %v813_v37 }
  0xc0   : > { %v3512_v44 = vpop.eup %3511  ;;  %v816_v45 = vadd.f32 %v4096_v9, %v746_v41 }
  0xc1   : > { %v815_v46 = vadd.f32 %v4096_v9, %v745_v42  ;;  %v3514_v47 = vpop.eup %3513  ;;  %3088 = vmatmul.mubr.bf16.gmra.mrb[12].mxu0 %v926_v43  ;;  %v530_v48 = vpop.permute.xlu1 %529 }
  0xc2   : > { %v525_v49 = vpop.permute.xlu0 %524  ;;  %3523 = vtanh.f32 %v816_v45  ;;  %v748_v50 = vmul.f32 %v4091_v8, %v530_v48  ;;  %v927_v52 = vpack.c.bf16 %v3512_v44, %v3514_v47 }
  0xc3   : > { %v747_v51 = vmul.f32 %v4091_v8, %v525_v49  ;;  %3525 = vtanh.f32 %v815_v46 }
  0xc4   : > { %v3516_v53 = vpop.eup %3515  ;;  %v818_v54 = vadd.f32 %v4096_v9, %v748_v50  ;;  %3091 = vmatprep.mubr.bf16.mxu0 %v927_v52 }
  0xc5   : > { %v817_v55 = vadd.f32 %v4096_v9, %v747_v51  ;;  %v3518_v56 = vpop.eup %3517  ;;  %v540_v57 = vpop.permute.xlu1 %539 }
  0xc6   : > { %v535_v58 = vpop.permute.xlu0 %534  ;;  %3527 = vtanh.f32 %v818_v54  ;;  %v750_v59 = vmul.f32 %v4091_v8, %v540_v57  ;;  %v928_v61 = vpack.c.bf16 %v3516_v53, %v3518_v56 }
  0xc7   : > { %v749_v60 = vmul.f32 %v4091_v8, %v535_v58  ;;  %3529 = vtanh.f32 %v817_v55 }
  0xc8   : > { %v3520_v62 = vpop.eup %3519  ;;  %v820_v63 = vadd.f32 %v4096_v9, %v750_v59 }
  0xc9   : > { %v819_v0 = vadd.f32 %v4096_v9, %v749_v60  ;;  %v3522_v1 = vpop.eup %3521  ;;  %3092 = vmatmul.mubr.bf16.gmra.mrb[16].mxu0 %v928_v61  ;;  %v550_v2 = vpop.permute.xlu1 %549 }
  0xca   : > { %v545_v3 = vpop.permute.xlu0 %544  ;;  %3531 = vtanh.f32 %v820_v63  ;;  %v752_v4 = vmul.f32 %v4091_v8, %v550_v2  ;;  %v929_v6 = vpack.c.bf16 %v3520_v62, %v3522_v1 }
  0xcb   : > { %v751_v5 = vmul.f32 %v4091_v8, %v545_v3  ;;  %3533 = vtanh.f32 %v819_v0 }
  0xcc   : > { %v3524_v7 = vpop.eup %3523  ;;  %v822_v10 = vadd.f32 %v4096_v9, %v752_v4  ;;  %3095 = vmatprep.mubr.bf16.mxu0 %v929_v6 }
  0xcd   : > { %v821_v11 = vadd.f32 %v4096_v9, %v751_v5  ;;  %v3526_v12 = vpop.eup %3525  ;;  %v560_v13 = vpop.permute.xlu1 %559 }
  0xce   : > { %v555_v14 = vpop.permute.xlu0 %554  ;;  %3535 = vtanh.f32 %v822_v10  ;;  %v754_v15 = vmul.f32 %v4091_v8, %v560_v13  ;;  %v930_v17 = vpack.c.bf16 %v3524_v7, %v3526_v12 }
  0xcf   : > { %v753_v16 = vmul.f32 %v4091_v8, %v555_v14  ;;  %3537 = vtanh.f32 %v821_v11  ;;  %v3464_v11 = vld [vmem:[%s4836_s5 + $0x8] sm:$0xff]  }
  0xd0   : > { %v3528_v18 = vpop.eup %3527  ;;  %v824_v19 = vadd.f32 %v4096_v9, %v754_v15 }
  0xd1   : > { %v823_v20 = vadd.f32 %v4096_v9, %v753_v16  ;;  %v3530_v21 = vpop.eup %3529  ;;  %3096 = vmatmul.mubr.bf16.gmra.mrb[20].mxu0 %v930_v17  ;;  %v570_v22 = vpop.permute.xlu1 %569 }
  0xd2   : > { %v565_v23 = vpop.permute.xlu0 %564  ;;  %3539 = vtanh.f32 %v824_v19  ;;  %v756_v24 = vmul.f32 %v4091_v8, %v570_v22  ;;  %v931_v26 = vpack.c.bf16 %v3528_v18, %v3530_v21  ;;  %v3465_v21 = vld [vmem:[%s4836_s5 + $0x10] sm:$0xff]  }
  0xd3   : > { %v755_v25 = vmul.f32 %v4091_v8, %v565_v23  ;;  %3541 = vtanh.f32 %v823_v20 }
  0xd4   : > { %v3532_v27 = vpop.eup %3531  ;;  %v826_v28 = vadd.f32 %v4096_v9, %v756_v24  ;;  %3099 = vmatprep.mubr.bf16.mxu0 %v931_v26 }
  0xd5   : > { %v825_v29 = vadd.f32 %v4096_v9, %v755_v25  ;;  %v3534_v30 = vpop.eup %3533  ;;  %v580_v31 = vpop.permute.xlu1 %579 }
  0xd6   : > { %v575_v32 = vpop.permute.xlu0 %574  ;;  %3543 = vtanh.f32 %v826_v28  ;;  %v758_v33 = vmul.f32 %v4091_v8, %v580_v31  ;;  %v932_v36 = vpack.c.bf16 %v3532_v27, %v3534_v30  ;;  %v3466_v30 = vld [vmem:[%s4836_s5 + $0x18] sm:$0xff]  }
  0xd7   : > { %v757_v35 = vmul.f32 %v4091_v8, %v575_v32  ;;  %3545 = vtanh.f32 %v825_v29 }
  0xd8   : > { %v3536_v37 = vpop.eup %3535  ;;  %v828_v38 = vadd.f32 %v4096_v9, %v758_v33 }
  0xd9   : > { %v827_v39 = vadd.f32 %v4096_v9, %v757_v35  ;;  %v3538_v40 = vpop.eup %3537  ;;  %3100 = vmatmul.mubr.bf16.gmra.mrb[24].mxu0 %v932_v36  ;;  %v590_v41 = vpop.permute.xlu1 %589 }
  0xda   : > { %v585_v42 = vpop.permute.xlu0 %584  ;;  %3547 = vtanh.f32 %v828_v38  ;;  %v760_v43 = vmul.f32 %v4091_v8, %v590_v41  ;;  %v933_v45 = vpack.c.bf16 %v3536_v37, %v3538_v40  ;;  %v3467_v41 = vld [vmem:[%s4836_s5 + $0x20] sm:$0xff]  }
  0xdb   : > { %v759_v44 = vmul.f32 %v4091_v8, %v585_v42  ;;  %3549 = vtanh.f32 %v827_v39 }
  0xdc   : > { %v3540_v46 = vpop.eup %3539  ;;  %v830_v47 = vadd.f32 %v4096_v9, %v760_v43  ;;  %3103 = vmatprep.mubr.bf16.mxu0 %v933_v45 }
  0xdd   : > { %v829_v48 = vadd.f32 %v4096_v9, %v759_v44  ;;  %v3542_v49 = vpop.eup %3541  ;;  %v600_v50 = vpop.permute.xlu1 %599 }
  0xde   : > { %v595_v51 = vpop.permute.xlu0 %594  ;;  %3551 = vtanh.f32 %v830_v47  ;;  %v762_v52 = vmul.f32 %v4091_v8, %v600_v50  ;;  %v934_v54 = vpack.c.bf16 %v3540_v46, %v3542_v49 }
  0xdf   : > { %v761_v53 = vmul.f32 %v4091_v8, %v595_v51  ;;  %3553 = vtanh.f32 %v829_v48  ;;  %v3468_v51 = vld [vmem:[%s4836_s5 + $0x28] sm:$0xff]  }
  0xe0   : > { %v3544_v55 = vpop.eup %3543  ;;  %v832_v56 = vadd.f32 %v4096_v9, %v762_v52 }
  0xe1   : > { %v831_v57 = vadd.f32 %v4096_v9, %v761_v53  ;;  %v3546_v58 = vpop.eup %3545  ;;  %3104 = vmatmul.mubr.bf16.gmra.mrb[28].mxu0 %v934_v54  ;;  %v610_v59 = vpop.permute.xlu1 %609 }
  0xe2   : > { %v605_v60 = vpop.permute.xlu0 %604  ;;  %3555 = vtanh.f32 %v832_v56  ;;  %v764_v61 = vmul.f32 %v4091_v8, %v610_v59  ;;  %v935_v63 = vpack.c.bf16 %v3544_v55, %v3546_v58 }
  0xe3   : > { %v763_v62 = vmul.f32 %v4091_v8, %v605_v60  ;;  %3557 = vtanh.f32 %v831_v57 }
  0xe4   : > { %v3548_v0 = vpop.eup %3547  ;;  %v834_v1 = vadd.f32 %v4096_v9, %v764_v61  ;;  %3107 = vmatprep.mubr.bf16.mxu1 %v935_v63 }
  0xe5   : > { %v833_v2 = vadd.f32 %v4096_v9, %v763_v62  ;;  %v3550_v3 = vpop.eup %3549  ;;  %v620_v4 = vpop.permute.xlu1 %619 }
  0xe6   : > { %v615_v5 = vpop.permute.xlu0 %614  ;;  %3559 = vtanh.f32 %v834_v1  ;;  %v766_v6 = vmul.f32 %v4091_v8, %v620_v4  ;;  %v936_v10 = vpack.c.bf16 %v3548_v0, %v3550_v3 }
  0xe7   : > { %v765_v7 = vmul.f32 %v4091_v8, %v615_v5  ;;  %3561 = vtanh.f32 %v833_v2 }
  0xe8   : > { %v3552_v12 = vpop.eup %3551  ;;  %v836_v13 = vadd.f32 %v4096_v9, %v766_v6  ;;  %3108 = vmatmul.mubr.bf16.vlgmr.msra.gmra.mrb[0].mxu1 %v936_v10 }
  0xe9   : > { %v835_v14 = vadd.f32 %v4096_v9, %v765_v7  ;;  %v3554_v15 = vpop.eup %3553  ;;  %v630_v16 = vpop.permute.xlu1 %629  ;;  %3140 = vmatpush3.bf16.msra.mxu1 %v4117_v34 }
  0xea   : > { %v625_v17 = vpop.permute.xlu0 %624  ;;  %3563 = vtanh.f32 %v836_v13  ;;  %v768_v18 = vmul.f32 %v4091_v8, %v630_v16  ;;  %v937_v20 = vpack.c.bf16 %v3552_v12, %v3554_v15  ;;  %3141 = vmatprep.subr.bf16.mxu1 %v3464_v11 }
  0xeb   : > { %v767_v19 = vmul.f32 %v4091_v8, %v625_v17  ;;  %3565 = vtanh.f32 %v835_v14  ;;  %v3469_v17 = vld [vmem:[%s4836_s5 + $0x30] sm:$0xff]  }
  0xec   : > { %v3556_v22 = vpop.eup %3555  ;;  %v838_v23 = vadd.f32 %v4096_v9, %v768_v18  ;;  %3111 = vmatprep.mubr.bf16.mxu1 %v937_v20 }
  0xed   : > { %v837_v24 = vadd.f32 %v4096_v9, %v767_v19  ;;  %v3558_v25 = vpop.eup %3557  ;;  %v640_v34 = vpop.permute.xlu1 %639  ;;  %3142 = vmatpush3.bf16.msra.mxu1 %v3464_v11 }
  0xee   : > { %v635_v26 = vpop.permute.xlu0 %634  ;;  %3567 = vtanh.f32 %v838_v23  ;;  %v770_v27 = vmul.f32 %v4091_v8, %v640_v34  ;;  %v938_v29 = vpack.c.bf16 %v3556_v22, %v3558_v25  ;;  %3143 = vmatprep.subr.bf16.mxu1 %v3465_v21 }
  0xef   : > { %v769_v28 = vmul.f32 %v4091_v8, %v635_v26  ;;  %3569 = vtanh.f32 %v837_v24 }
  0xf0   : > { %v3560_v31 = vpop.eup %3559  ;;  %v840_v32 = vadd.f32 %v4096_v9, %v770_v27  ;;  %3112 = vmatmul.mubr.bf16.gmra.mrb[4].mxu1 %v938_v29 }
  0xf1   : > { %v839_v33 = vadd.f32 %v4096_v9, %v769_v28  ;;  %v3562_v35 = vpop.eup %3561  ;;  %v650_v36 = vpop.permute.xlu1 %649  ;;  %3144 = vmatpush3.bf16.msra.mxu1 %v3465_v21 }
  0xf2   : > { %v645_v37 = vpop.permute.xlu0 %644  ;;  %3571 = vtanh.f32 %v840_v32  ;;  %v772_v38 = vmul.f32 %v4091_v8, %v650_v36  ;;  %v939_v40 = vpack.c.bf16 %v3560_v31, %v3562_v35  ;;  %3145 = vmatprep.subr.bf16.mxu1 %v3466_v30  ;;  %v3470_v36 = vld [vmem:[%s4836_s5 + $0x38] sm:$0xff]  }
  0xf3   : > { %v771_v39 = vmul.f32 %v4091_v8, %v645_v37  ;;  %3573 = vtanh.f32 %v839_v33 }
  0xf4   : > { %v3564_v42 = vpop.eup %3563  ;;  %v842_v43 = vadd.f32 %v4096_v9, %v772_v38  ;;  %3115 = vmatprep.mubr.bf16.mxu1 %v939_v40 }
  0xf5   : > { %v841_v44 = vadd.f32 %v4096_v9, %v771_v39  ;;  %v3566_v45 = vpop.eup %3565  ;;  %v660_v46 = vpop.permute.xlu1 %659  ;;  %3146 = vmatpush3.bf16.msra.mxu1 %v3466_v30 }
  0xf6   : > { %v655_v47 = vpop.permute.xlu0 %654  ;;  %3575 = vtanh.f32 %v842_v43  ;;  %v774_v48 = vmul.f32 %v4091_v8, %v660_v46  ;;  %v940_v50 = vpack.c.bf16 %v3564_v42, %v3566_v45  ;;  %3147 = vmatprep.subr.bf16.mxu1 %v3467_v41 }
  0xf7   : > { %v773_v49 = vmul.f32 %v4091_v8, %v655_v47  ;;  %3577 = vtanh.f32 %v841_v44 }
  0xf8   : > { %v3568_v52 = vpop.eup %3567  ;;  %v844_v53 = vadd.f32 %v4096_v9, %v774_v48  ;;  %3116 = vmatmul.mubr.bf16.gmra.mrb[8].mxu1 %v940_v50 }
  0xf9   : > { %v843_v54 = vadd.f32 %v4096_v9, %v773_v49  ;;  %v3570_v55 = vpop.eup %3569  ;;  %v670_v56 = vpop.permute.xlu1 %669  ;;  %3148 = vmatpush3.bf16.msra.mxu1 %v3467_v41 }
  0xfa   : > { %v665_v57 = vpop.permute.xlu0 %664  ;;  %3579 = vtanh.f32 %v844_v53  ;;  %v776_v58 = vmul.f32 %v4091_v8, %v670_v56  ;;  %v941_v60 = vpack.c.bf16 %v3568_v52, %v3570_v55  ;;  %3149 = vmatprep.subr.bf16.mxu1 %v3468_v51 }
  0xfb   : > { %v775_v59 = vmul.f32 %v4091_v8, %v665_v57  ;;  %3581 = vtanh.f32 %v843_v54 }
  0xfc   : > { %v3572_v61 = vpop.eup %3571  ;;  %v846_v62 = vadd.f32 %v4096_v9, %v776_v58  ;;  %3119 = vmatprep.mubr.bf16.mxu1 %v941_v60 }
  0xfd   : > { %v845_v63 = vadd.f32 %v4096_v9, %v775_v59  ;;  %v3574_v0 = vpop.eup %3573  ;;  %v680_v1 = vpop.permute.xlu1 %679  ;;  %3150 = vmatpush3.bf16.msra.mxu1 %v3468_v51 }
  0xfe   : > { %v675_v2 = vpop.permute.xlu0 %674  ;;  %3583 = vtanh.f32 %v846_v62  ;;  %v778_v3 = vmul.f32 %v4091_v8, %v680_v1  ;;  %v942_v5 = vpack.c.bf16 %v3572_v61, %v3574_v0  ;;  %3151 = vmatprep.subr.bf16.mxu1 %v3469_v17  ;;  %v3858_v1 = vld [vmem:[%s4008_s22 + $0x8] sm:$0xff] }
  0xff   : > { %v777_v4 = vmul.f32 %v4091_v8, %v675_v2  ;;  %3585 = vtanh.f32 %v845_v63  ;;  %v3857_v63 = vld [vmem:[%s4008_s22] sm:$0xff]  ;;  %v3317_v2 = vtrunc.f32 %v3858_v1 }
 0x100   : > { %v3576_v6 = vpop.eup %3575  ;;  %v848_v7 = vadd.f32 %v4096_v9, %v778_v3  ;;  %3120 = vmatmul.mubr.bf16.gmra.mrb[12].mxu1 %v942_v5  ;;  %v3315_v0 = vtrunc.f32 %v3857_v63 }
 0x101   : > { %v847_v10 = vadd.f32 %v4096_v9, %v777_v4  ;;  %v3578_v11 = vpop.eup %3577  ;;  %v690_v12 = vpop.permute.xlu1 %689  ;;  %3152 = vmatpush3.bf16.msra.mxu1 %v3469_v17 }
 0x102   : > { %v685_v13 = vpop.permute.xlu0 %684  ;;  %3587 = vtanh.f32 %v848_v7  ;;  %v780_v14 = vmul.f32 %v4091_v8, %v690_v12  ;;  %v943_v16 = vpack.c.bf16 %v3576_v6, %v3578_v11  ;;  %3153 = vmatprep.subr.bf16.mxu1 %v3470_v36  ;;  %v3859_v6 = vld [vmem:[%s4008_s22 + $0x10] sm:$0xff] }
 0x103   : > { %v779_v15 = vmul.f32 %v4091_v8, %v685_v13  ;;  %3589 = vtanh.f32 %v847_v10  ;;  %v3319_v7 = vtrunc.f32 %v3859_v6  ;;  %v3316_v10 = vcvt.f32.s32 %v3315_v0  ;;  %v3475_v0 = vld [vmem:[%s4838_s7 + $0x20] sm:$0xff]  }
 0x104   : > { %v3580_v18 = vpop.eup %3579  ;;  %v850_v19 = vadd.f32 %v4096_v9, %v780_v14  ;;  %3123 = vmatprep.mubr.bf16.mxu1 %v943_v16  ;;  %v3318_v13 = vcvt.f32.s32 %v3317_v2  ;;  %v3860_v16 = vld [vmem:[%s4008_s22 + $0x20] sm:$0xff]  ;;  %v3867_v2 = vld [vmem:[%s4008_s22 + $0x48] sm:$0xff] }
 0x105   : > { %v849_v20 = vadd.f32 %v4096_v9, %v779_v15  ;;  %v3582_v21 = vpop.eup %3581  ;;  %v700_v22 = vpop.permute.xlu1 %699  ;;  %3154 = vmatpush3.bf16.msra.mxu1 %v3470_v36  ;;  %v3323_v17 = vtrunc.f32 %v3860_v16 }
 0x106   : > { %v695_v23 = vpop.permute.xlu0 %694  ;;  %3591 = vtanh.f32 %v850_v19  ;;  %v782_v24 = vmul.f32 %v4091_v8, %v700_v22  ;;  %v944_v34 = vpack.c.bf16 %v3580_v18, %v3582_v21  ;;  %v3471_v19 = vld [vmem:[%s4838_s7] sm:$0xff]   ;;  %v3929_v22 = vmov 1  }
 0x107   : > { %v781_v25 = vmul.f32 %v4091_v8, %v695_v23  ;;  %3593 = vtanh.f32 %v849_v20  ;;  %v3472_v20 = vld [vmem:[%s4838_s7 + $0x8] sm:$0xff]   ;;  %3453 = vset.pattern.permute.xlu1 %v3929_v22  ;;  %3454 = vset.pattern.permute.xlu0 %v3929_v22 }
 0x108   : > { %v3584_v26 = vpop.eup %3583  ;;  %v852_v27 = vadd.f32 %v4096_v9, %v782_v24  ;;  %3124 = vmatmul.mubr.bf16.gmra.mrb[16].mxu1 %v944_v34  ;;  %v3320_v24 = vcvt.f32.s32 %v3319_v7  ;;  %2277 = vperm.xlu1 %3453, %v3316_v10  }
 0x109   : > { %v851_v28 = vadd.f32 %v4096_v9, %v781_v25  ;;  %v3586_v29 = vpop.eup %3585  ;;  %v710_v30 = vpop.permute.xlu1 %709  ;;  %v3861_v25 = vld [vmem:[%s4008_s22 + $0x18] sm:$0xff]  ;;  %3219 = vmatprep.subr.bf16.mxu0 %v3471_v19  ;;  %2280 = vperm.xlu0 %3454, %v3318_v13  }
 0x10a   : > { %v705_v31 = vpop.permute.xlu0 %704  ;;  %3595 = vtanh.f32 %v852_v27  ;;  %v784_v32 = vmul.f32 %v4091_v8, %v710_v30  ;;  %v945_v35 = vpack.c.bf16 %v3584_v26, %v3586_v29  ;;  %v3321_v34 = vtrunc.f32 %v3861_v25  ;;  %3220 = vmatpush3.bf16.msra.mxu0 %v3471_v19  ;;  %v3862_v29 = vld [vmem:[%s4008_s22 + $0x30] sm:$0xff] }
 0x10b   : > { %v783_v33 = vmul.f32 %v4091_v8, %v705_v31  ;;  %3597 = vtanh.f32 %v851_v28  ;;  %v3324_v28 = vcvt.f32.s32 %v3323_v17  ;;  %v3327_v30 = vtrunc.f32 %v3862_v29  ;;  %3221 = vmatprep.subr.bf16.mxu0 %v3472_v20 }
 0x10c   : > { %v3588_v37 = vpop.eup %3587  ;;  %v854_v38 = vadd.f32 %v4096_v9, %v784_v32  ;;  %3127 = vmatprep.mubr.bf16.mxu1 %v945_v35  ;;  %2283 = vperm.xlu1 %3453, %v3320_v24  }
 0x10d   : > { %v853_v39 = vadd.f32 %v4096_v9, %v783_v33  ;;  %v3590_v40 = vpop.eup %3589  ;;  %2289 = vperm.xlu0 %3454, %v3324_v28  }
 0x10e   : > { %v715_v41 = vpop.permute.xlu0 %714  ;;  %3599 = vtanh.f32 %v854_v38  ;;  %v946_v43 = vpack.c.bf16 %v3588_v37, %v3590_v40  ;;  %v3473_v37 = vld [vmem:[%s4838_s7 + $0x10] sm:$0xff]   ;;  %v3322_v38 = vcvt.f32.s32 %v3321_v34  ;;  %3222 = vmatpush3.bf16.msra.mxu0 %v3472_v20 }
 0x10f   : > { %v785_v42 = vmul.f32 %v4091_v8, %v715_v41  ;;  %3601 = vtanh.f32 %v853_v39  ;;  %v3863_v39 = vld [vmem:[%s4008_s22 + $0x28] sm:$0xff]  ;;  %3223 = vmatprep.subr.bf16.mxu0 %v3473_v37 }
 0x110   : > { %v3592_v44 = vpop.eup %3591  ;;  %3128 = vmatmul.mubr.bf16.gmra.mrb[20].mxu1 %v946_v43  ;;  %v3325_v40 = vtrunc.f32 %v3863_v39  ;;  %2286 = vperm.xlu1 %3453, %v3322_v38   ;;  %v3872_v38 = vld [vmem:[%s4008_s22 + $0x80] sm:$0xff] }
 0x111   : > { %v855_v45 = vadd.f32 %v4096_v9, %v785_v42  ;;  %v3594_v46 = vpop.eup %3593  ;;  %v4255_v9 = vld [vmem:[%s4835_s4] ss:$0 sm:$0xff]  ;;  %v3347_v39 = vtrunc.f32 %v3872_v38  ;;  %v3882_v38 = vld [vmem:[%s4008_s22 + $0xd0] sm:$0xff] }
 0x112   : > { %v947_v47 = vpack.c.bf16 %v3592_v44, %v3594_v46  ;;  %v3864_v46 = vld [vmem:[%s4008_s22 + $0x40] sm:$0xff]  ;;  %3224 = vmatpush3.bf16.msra.mxu0 %v3473_v37 }
 0x113   : > { %3603 = vtanh.f32 %v855_v45  ;;  %v3328_v45 = vcvt.f32.s32 %v3327_v30  ;;  %v3871_v30 = vld [vmem:[%s4008_s22 + $0x68] sm:$0xff] }
 0x114   : > { %v3596_v48 = vpop.eup %3595  ;;  %3131 = vmatprep.mubr.bf16.mxu1 %v947_v47  ;;  %v3331_v47 = vtrunc.f32 %v3864_v46 }
 0x115   : > { %v3598_v49 = vpop.eup %3597  ;;  %2295 = vperm.xlu0 %3454, %v3328_v45  }
 0x116   : > { %v948_v50 = vpack.c.bf16 %v3596_v48, %v3598_v49  ;;  %v3474_v49 = vld [vmem:[%s4838_s7 + $0x18] sm:$0xff]  }
 0x117   : > { %3225 = vmatprep.subr.bf16.mxu0 %v3474_v49 }
 0x118   : > { %v3600_v51 = vpop.eup %3599  ;;  %3132 = vmatmul.mubr.bf16.gmra.mrb[24].mxu1 %v948_v50  ;;  %3226 = vmatpush3.bf16.msra.mxu0 %v3474_v49  ;;  %v3874_v49 = vld [vmem:[%s4008_s22 + $0x90] sm:$0xff] }
 0x119   : > { %v3602_v52 = vpop.eup %3601  ;;  %3227 = vmatprep.subr.bf16.mxu0 %v3475_v0 }
 0x11a   : > { %v949_v53 = vpack.c.bf16 %v3600_v51, %v3602_v52  ;;  %v3326_v52 = vcvt.f32.s32 %v3325_v40 }
 0x11c   : > { %3135 = vmatprep.mubr.bf16.mxu1 %v949_v53  ;;  %v3865_v53 = vld [vmem:[%s4008_s22 + $0x38] sm:$0xff]  ;;  %2292 = vperm.xlu1 %3453, %v3326_v52  }
 0x11d   : > { %v3604_v54 = vpop.eup %3603  ;;  %3228 = vmatpush3.bf16.msra.mxu0 %v3475_v0 }
 0x11e   : > { %v950_v8 = vpack.c.bf16 %v3604_v54, %v3604_v54  ;;  %v3329_v54 = vtrunc.f32 %v3865_v53 }
 0x120   : > { %3136 = vmatmul.mubr.bf16.gmra.mrb[28].mxu1 %v950_v8  ;;  %v3330_v1 = vcvt.f32.s32 %v3329_v54 }
 0x122   : > { %2298 = vperm.xlu1 %3453, %v3330_v1  }
 0x17c   : > { %v3077_v55 = vpop.f32.mrb[0].mxu0 }
 0x17d   : > { %v1065_v56 = vadd.f32 %v3077_v55, %v4255_v9  ;;  %v1056_v57 = vpop.f32.mrb[1].mxu0 }
 0x17e   : > { %v1057_v58 = vadd.f32 %v4255_v9, %v1056_v57  ;;  %v3078_v59 = vpop.f32.mrb[2].mxu0  ;;  %v3866_v57 = vld [vmem:[%s4008_s22 + $0x50] sm:$0xff] }
 0x17f   : > { %3605 = vtanh.f32 %v1065_v56  ;;  %v1068_v60 = vadd.f32 %v3078_v59, %v4255_v9  ;;  %v1059_v61 = vpop.f32.mrb[3].mxu0  ;;  %v3332_v56 = vcvt.f32.s32 %v3331_v47 }
 0x180   : > { %3607 = vtanh.f32 %v1057_v58  ;;  %v1060_v62 = vadd.f32 %v4255_v9, %v1059_v61  ;;  %v3335_v58 = vtrunc.f32 %v3866_v57 }
 0x181   : > { %3609 = vtanh.f32 %v1068_v60  ;;  %2301 = vperm.xlu0 %3454, %v3332_v56   ;;  %v3875_v56 = vld [vmem:[%s4008_s22 + $0x88] sm:$0xff] }
 0x182   : > { %3611 = vtanh.f32 %v1060_v62  ;;  %v3336_v10 = vcvt.f32.s32 %v3335_v58  ;;  %v3349_v57 = vtrunc.f32 %v3875_v56 }
 0x184   : > { %v3081_v3 = vpop.f32.mrb[4].mxu0 }
 0x185   : > { %v1081_v4 = vadd.f32 %v3081_v3, %v4255_v9  ;;  %v1072_v5 = vpop.f32.mrb[5].mxu0  ;;  %v3333_v3 = vtrunc.f32 %v3867_v2  ;;  %2307 = vperm.xlu0 %3454, %v3336_v10  }
 0x186   : > { %v1073_v11 = vadd.f32 %v4255_v9, %v1072_v5  ;;  %v3082_v12 = vpop.f32.mrb[6].mxu0 }
 0x187   : > { %3613 = vtanh.f32 %v1081_v4  ;;  %v1084_v14 = vadd.f32 %v3082_v12, %v4255_v9  ;;  %v1075_v15 = vpop.f32.mrb[7].mxu0  ;;  %v3334_v17 = vcvt.f32.s32 %v3333_v3 }
 0x188   : > { %3615 = vtanh.f32 %v1073_v11  ;;  %v1076_v18 = vadd.f32 %v4255_v9, %v1075_v15  ;;  %v3868_v11 = vld [vmem:[%s4008_s22 + $0x60] sm:$0xff] }
 0x189   : > { %v3606_v21 = vpop.eup %3605  ;;  %3617 = vtanh.f32 %v1084_v14  ;;  %v3339_v12 = vtrunc.f32 %v3868_v11  ;;  %v3476_v14 = vld [vmem:[%s4838_s7 + $0x28] sm:$0xff]   ;;  %2304 = vperm.xlu1 %3453, %v3334_v17  }
 0x18a   : > { %v3608_v23 = vpop.eup %3607  ;;  %3619 = vtanh.f32 %v1076_v18  ;;  %v3869_v18 = vld [vmem:[%s4008_s22 + $0x58] sm:$0xff]  ;;  %3229 = vmatprep.subr.bf16.mxu0 %v3476_v14 }
 0x18b   : > { %v3610_v26 = vpop.eup %3609  ;;  %v3337_v19 = vtrunc.f32 %v3869_v18  ;;  %v3340_v22 = vcvt.f32.s32 %v3339_v12  ;;  %3230 = vmatpush3.bf16.msra.mxu0 %v3476_v14  ;;  %v3878_v12 = vld [vmem:[%s4008_s22 + $0xb0] sm:$0xff] }
 0x18c   : > { %v3612_v27 = vpop.eup %3611  ;;  %v3085_v31 = vpop.f32.mrb[8].mxu0  ;;  %v1374_v32 = vpack.c.bf16 %v3610_v26, %v3606_v21 }
 0x18d   : > { %v1097_v33 = vadd.f32 %v3085_v31, %v4255_v9  ;;  %v1088_v35 = vpop.f32.mrb[9].mxu0  ;;  %v1373_v36 = vpack.c.bf16 %v3612_v27, %v3608_v23  ;;  %v3870_v23 = vld [vmem:[%s4008_s22 + $0x70] sm:$0xff]  ;;  %v3338_v29 = vcvt.f32.s32 %v3337_v19  ;;  %v3341_v31 = vtrunc.f32 %v3871_v30  ;;  %2313 = vperm.xlu0 %3454, %v3340_v22  }
 0x18e   : > { %v1089_v41 = vadd.f32 %v4255_v9, %v1088_v35  ;;  %v3086_v42 = vpop.f32.mrb[10].mxu0  ;;  %v3343_v24 = vtrunc.f32 %v3870_v23 }
 0x18f   : > { %3621 = vtanh.f32 %v1097_v33  ;;  %v1100_v43 = vadd.f32 %v3086_v42, %v4255_v9  ;;  %v1091_v44 = vpop.f32.mrb[11].mxu0  ;;  %3155 = vmatprep.mubr.bf16.mxu1 %v1373_v36  ;;  %2310 = vperm.xlu1 %3453, %v3338_v29  }
 0x190   : > { %3623 = vtanh.f32 %v1089_v41  ;;  %v1092_v48 = vadd.f32 %v4255_v9, %v1091_v44  ;;  %3156 = vmatmul.mubr.bf16.vlgmr.msra.gmra.mrb[32].mxu1 %v1374_v32  ;;  %v3344_v37 = vcvt.f32.s32 %v3343_v24  ;;  %v3873_v44 = vld [vmem:[%s4008_s22 + $0x78] sm:$0xff] }
 0x191   : > { %v3614_v50 = vpop.eup %3613  ;;  %3625 = vtanh.f32 %v1100_v43  ;;  %v3342_v43 = vcvt.f32.s32 %v3341_v31  ;;  %v3345_v45 = vtrunc.f32 %v3873_v44 }
 0x192   : > { %v3616_v51 = vpop.eup %3615  ;;  %3627 = vtanh.f32 %v1092_v48  ;;  %v3348_v48 = vcvt.f32.s32 %v3347_v39  ;;  %2319 = vperm.xlu0 %3454, %v3344_v37   ;;  %v3367_v39 = vtrunc.f32 %v3882_v38 }
 0x193   : > { %v3618_v8 = vpop.eup %3617  ;;  %2316 = vperm.xlu1 %3453, %v3342_v43  }
 0x194   : > { %v3620_v55 = vpop.eup %3619  ;;  %v3089_v59 = vpop.f32.mrb[12].mxu0  ;;  %v1376_v60 = vpack.c.bf16 %v3618_v8, %v3614_v50  ;;  %v3351_v50 = vtrunc.f32 %v3874_v49 }
 0x195   : > { %v1113_v61 = vadd.f32 %v3089_v59, %v4255_v9  ;;  %v1104_v62 = vpop.f32.mrb[13].mxu0  ;;  %v1375_v63 = vpack.c.bf16 %v3620_v55, %v3616_v51  ;;  %v3346_v55 = vcvt.f32.s32 %v3345_v45 }
 0x196   : > { %v1105_v4 = vadd.f32 %v4255_v9, %v1104_v62  ;;  %v3090_v5 = vpop.f32.mrb[14].mxu0  ;;  %v3352_v62 = vcvt.f32.s32 %v3351_v50  ;;  %2325 = vperm.xlu0 %3454, %v3348_v48  }
 0x197   : > { %3629 = vtanh.f32 %v1113_v61  ;;  %v1116_v6 = vadd.f32 %v3090_v5, %v4255_v9  ;;  %v1107_v7 = vpop.f32.mrb[15].mxu0  ;;  %3159 = vmatprep.mubr.bf16.mxu1 %v1375_v63  ;;  %v3876_v63 = vld [vmem:[%s4008_s22 + $0xa0] sm:$0xff]  ;;  %v3877_v5 = vld [vmem:[%s4008_s22 + $0x98] sm:$0xff]  ;;  %2322 = vperm.xlu1 %3453, %v3346_v55  }
 0x198   : > { %3631 = vtanh.f32 %v1105_v4  ;;  %v1108_v13 = vadd.f32 %v4255_v9, %v1107_v7  ;;  %3160 = vmatmul.mubr.bf16.gmra.mrb[36].mxu1 %v1376_v60  ;;  %v3355_v0 = vtrunc.f32 %v3876_v63  ;;  %v3350_v4 = vcvt.f32.s32 %v3349_v57 }
 0x199   : > { %v3622_v15 = vpop.eup %3621  ;;  %3633 = vtanh.f32 %v1116_v6  ;;  %v3353_v6 = vtrunc.f32 %v3877_v5 }
 0x19a   : > { %v3624_v16 = vpop.eup %3623  ;;  %3635 = vtanh.f32 %v1108_v13  ;;  %v3356_v11 = vcvt.f32.s32 %v3355_v0  ;;  %v3359_v13 = vtrunc.f32 %v3878_v12  ;;  %2331 = vperm.xlu0 %3454, %v3352_v62   ;;  %v3886_v0 = vld [vmem:[%s4008_s22 + $0xf0] sm:$0xff] }
 0x19b   : > { %v3626_v20 = vpop.eup %3625  ;;  %v3354_v19 = vcvt.f32.s32 %v3353_v6  ;;  %2328 = vperm.xlu1 %3453, %v3350_v4  }
 0x19c   : > { %v3628_v21 = vpop.eup %3627  ;;  %v3093_v25 = vpop.f32.mrb[16].mxu0  ;;  %v1378_v34 = vpack.c.bf16 %v3626_v20, %v3622_v15  ;;  %v3879_v20 = vld [vmem:[%s4008_s22 + $0xa8] sm:$0xff] }
 0x19d   : > { %v1129_v26 = vadd.f32 %v3093_v25, %v4255_v9  ;;  %v1120_v27 = vpop.f32.mrb[17].mxu0  ;;  %v1377_v28 = vpack.c.bf16 %v3628_v21, %v3624_v16  ;;  %v3357_v21 = vtrunc.f32 %v3879_v20 }
 0x19e   : > { %v1121_v32 = vadd.f32 %v4255_v9, %v1120_v27  ;;  %v3094_v33 = vpop.f32.mrb[18].mxu0  ;;  %2337 = vperm.xlu0 %3454, %v3356_v11   ;;  %v3887_v11 = vld [vmem:[%s4008_s22 + $0xe8] sm:$0xff] }
 0x19f   : > { %3637 = vtanh.f32 %v1129_v26  ;;  %v1132_v35 = vadd.f32 %v3094_v33, %v4255_v9  ;;  %v1123_v36 = vpop.f32.mrb[19].mxu0  ;;  %3163 = vmatprep.mubr.bf16.mxu1 %v1377_v28  ;;  %v3880_v26 = vld [vmem:[%s4008_s22 + $0xc0] sm:$0xff]  ;;  %v3358_v31 = vcvt.f32.s32 %v3357_v21  ;;  %2334 = vperm.xlu1 %3453, %v3354_v19   ;;  %v3373_v12 = vtrunc.f32 %v3887_v11 }
 0x1a0   : > { %3639 = vtanh.f32 %v1121_v32  ;;  %v1124_v40 = vadd.f32 %v4255_v9, %v1123_v36  ;;  %3164 = vmatmul.mubr.bf16.gmra.mrb[40].mxu1 %v1378_v34  ;;  %v3360_v34 = vcvt.f32.s32 %v3359_v13  ;;  %v3363_v27 = vtrunc.f32 %v3880_v26  ;;  %v3881_v32 = vld [vmem:[%s4008_s22 + $0xb8] sm:$0xff] }
 0x1a1   : > { %v3630_v41 = vpop.eup %3629  ;;  %3641 = vtanh.f32 %v1132_v35  ;;  %v3361_v33 = vtrunc.f32 %v3881_v32  ;;  %v3374_v21 = vcvt.f32.s32 %v3373_v12  ;;  %v3897_v12 = vld [vmem:[%s4008_s22 + $0x138] sm:$0xff] }
 0x1a2   : > { %v3632_v42 = vpop.eup %3631  ;;  %3643 = vtanh.f32 %v1124_v40  ;;  %v3364_v37 = vcvt.f32.s32 %v3363_v27  ;;  %2343 = vperm.xlu0 %3454, %v3360_v34   ;;  %v3890_v27 = vld [vmem:[%s4008_s22 + $0x110] sm:$0xff] }
 0x1a3   : > { %v3634_v46 = vpop.eup %3633  ;;  %v3362_v45 = vcvt.f32.s32 %v3361_v33  ;;  %2340 = vperm.xlu1 %3453, %v3358_v31  }
 0x1a4   : > { %v3636_v47 = vpop.eup %3635  ;;  %v3097_v51 = vpop.f32.mrb[20].mxu0  ;;  %v1380_v52 = vpack.c.bf16 %v3634_v46, %v3630_v41  ;;  %v3883_v46 = vld [vmem:[%s4008_s22 + $0xc8] sm:$0xff] }
 0x1a5   : > { %v1145_v53 = vadd.f32 %v3097_v51, %v4255_v9  ;;  %v1136_v54 = vpop.f32.mrb[21].mxu0  ;;  %v1379_v8 = vpack.c.bf16 %v3636_v47, %v3632_v42  ;;  %v3365_v47 = vtrunc.f32 %v3883_v46 }
 0x1a6   : > { %v1137_v58 = vadd.f32 %v4255_v9, %v1136_v54  ;;  %v3098_v59 = vpop.f32.mrb[22].mxu0  ;;  %2349 = vperm.xlu0 %3454, %v3364_v37   ;;  %v3891_v37 = vld [vmem:[%s4008_s22 + $0x108] sm:$0xff] }
 0x1a7   : > { %3645 = vtanh.f32 %v1145_v53  ;;  %v1148_v60 = vadd.f32 %v3098_v59, %v4255_v9  ;;  %v1139_v61 = vpop.f32.mrb[23].mxu0  ;;  %3167 = vmatprep.mubr.bf16.mxu1 %v1379_v8  ;;  %v3884_v53 = vld [vmem:[%s4008_s22 + $0xe0] sm:$0xff]  ;;  %v3366_v57 = vcvt.f32.s32 %v3365_v47  ;;  %2346 = vperm.xlu1 %3453, %v3362_v45   ;;  %v3381_v38 = vtrunc.f32 %v3891_v37 }
 0x1a8   : > { %3647 = vtanh.f32 %v1137_v58  ;;  %v1140_v1 = vadd.f32 %v4255_v9, %v1139_v61  ;;  %3168 = vmatmul.mubr.bf16.gmra.mrb[44].mxu1 %v1380_v52  ;;  %v3368_v52 = vcvt.f32.s32 %v3367_v39  ;;  %v3371_v54 = vtrunc.f32 %v3884_v53  ;;  %v3885_v58 = vld [vmem:[%s4008_s22 + $0xd8] sm:$0xff] }
 0x1a9   : > { %v3638_v2 = vpop.eup %3637  ;;  %3649 = vtanh.f32 %v1148_v60  ;;  %v3369_v59 = vtrunc.f32 %v3885_v58 }
 0x1aa   : > { %v3640_v3 = vpop.eup %3639  ;;  %3651 = vtanh.f32 %v1140_v1  ;;  %v3372_v63 = vcvt.f32.s32 %v3371_v54  ;;  %v3375_v1 = vtrunc.f32 %v3886_v0  ;;  %2355 = vperm.xlu0 %3454, %v3368_v52  }
 0x1ab   : > { %v3642_v7 = vpop.eup %3641  ;;  %2352 = vperm.xlu1 %3453, %v3366_v57  }
 0x1ac   : > { %v3644_v10 = vpop.eup %3643  ;;  %v3101_v14 = vpop.f32.mrb[24].mxu0  ;;  %v1382_v15 = vpack.c.bf16 %v3642_v7, %v3638_v2 }
 0x1ad   : > { %v1161_v16 = vadd.f32 %v3101_v14, %v4255_v9  ;;  %v1152_v17 = vpop.f32.mrb[25].mxu0  ;;  %v1381_v18 = vpack.c.bf16 %v3644_v10, %v3640_v3  ;;  %v3370_v10 = vcvt.f32.s32 %v3369_v59 }
 0x1ae   : > { %v1153_v22 = vadd.f32 %v4255_v9, %v1152_v17  ;;  %v3102_v23 = vpop.f32.mrb[26].mxu0  ;;  %v3888_v17 = vld [vmem:[%s4008_s22 + $0x100] sm:$0xff]  ;;  %2361 = vperm.xlu0 %3454, %v3372_v63  }
 0x1af   : > { %3653 = vtanh.f32 %v1161_v16  ;;  %v1164_v24 = vadd.f32 %v3102_v23, %v4255_v9  ;;  %v1155_v25 = vpop.f32.mrb[27].mxu0  ;;  %3171 = vmatprep.mubr.bf16.mxu1 %v1381_v18  ;;  %v3376_v16 = vcvt.f32.s32 %v3375_v1  ;;  %v3379_v18 = vtrunc.f32 %v3888_v17  ;;  %2358 = vperm.xlu1 %3453, %v3370_v10  }
 0x1b0   : > { %3655 = vtanh.f32 %v1153_v22  ;;  %v1156_v28 = vadd.f32 %v4255_v9, %v1155_v25  ;;  %3172 = vmatmul.mubr.bf16.gmra.mrb[48].mxu1 %v1382_v15  ;;  %v3889_v22 = vld [vmem:[%s4008_s22 + $0xf8] sm:$0xff] }
 0x1b1   : > { %v3646_v29 = vpop.eup %3645  ;;  %3657 = vtanh.f32 %v1164_v24  ;;  %v3377_v23 = vtrunc.f32 %v3889_v22  ;;  %v3380_v26 = vcvt.f32.s32 %v3379_v18  ;;  %v3898_v18 = vld [vmem:[%s4008_s22 + $0x150] sm:$0xff] }
 0x1b2   : > { %v3648_v30 = vpop.eup %3647  ;;  %3659 = vtanh.f32 %v1156_v28  ;;  %v3383_v28 = vtrunc.f32 %v3890_v27  ;;  %2367 = vperm.xlu0 %3454, %v3376_v16  }
 0x1b3   : > { %v3650_v35 = vpop.eup %3649  ;;  %2364 = vperm.xlu1 %3453, %v3374_v21  }
 0x1b4   : > { %v3652_v36 = vpop.eup %3651  ;;  %v3105_v40 = vpop.f32.mrb[28].mxu0  ;;  %v1384_v41 = vpack.c.bf16 %v3650_v35, %v3646_v29 }
 0x1b5   : > { %v1177_v42 = vadd.f32 %v3105_v40, %v4255_v9  ;;  %v1168_v43 = vpop.f32.mrb[29].mxu0  ;;  %v1383_v44 = vpack.c.bf16 %v3652_v36, %v3648_v30  ;;  %v3378_v36 = vcvt.f32.s32 %v3377_v23 }
 0x1b6   : > { %v1169_v48 = vadd.f32 %v4255_v9, %v1168_v43  ;;  %v3106_v49 = vpop.f32.mrb[30].mxu0  ;;  %v3384_v43 = vcvt.f32.s32 %v3383_v28  ;;  %2373 = vperm.xlu0 %3454, %v3380_v26  }
 0x1b7   : > { %3661 = vtanh.f32 %v1177_v42  ;;  %v1180_v50 = vadd.f32 %v3106_v49, %v4255_v9  ;;  %v1171_v51 = vpop.f32.mrb[31].mxu0  ;;  %3175 = vmatprep.mubr.bf16.mxu1 %v1383_v44  ;;  %v3892_v44 = vld [vmem:[%s4008_s22 + $0x120] sm:$0xff]  ;;  %v3893_v49 = vld [vmem:[%s4008_s22 + $0x118] sm:$0xff]  ;;  %2370 = vperm.xlu1 %3453, %v3378_v36  }
 0x1b8   : > { %3663 = vtanh.f32 %v1169_v48  ;;  %v1172_v8 = vadd.f32 %v4255_v9, %v1171_v51  ;;  %3176 = vmatmul.mubr.bf16.gmra.mrb[52].mxu1 %v1384_v41  ;;  %v3387_v45 = vtrunc.f32 %v3892_v44  ;;  %v3382_v48 = vcvt.f32.s32 %v3381_v38  ;;  %v3901_v38 = vld [vmem:[%s4008_s22 + $0x158] sm:$0xff]  ;;  %v3902_v44 = vld [vmem:[%s4008_s22 + $0x170] sm:$0xff] }
 0x1b9   : > { %v3654_v55 = vpop.eup %3653  ;;  %3665 = vtanh.f32 %v1180_v50  ;;  %v3385_v50 = vtrunc.f32 %v3893_v49 }
 0x1ba   : > { %v3656_v56 = vpop.eup %3655  ;;  %3667 = vtanh.f32 %v1172_v8  ;;  %v3388_v54 = vcvt.f32.s32 %v3387_v45  ;;  %v3894_v8 = vld [vmem:[%s4008_s22 + $0x130] sm:$0xff]  ;;  %2379 = vperm.xlu0 %3454, %v3384_v43   ;;  %v3407_v45 = vtrunc.f32 %v3902_v44 }
 0x1bb   : > { %v3658_v60 = vpop.eup %3657  ;;  %v3109_v61 = vpop.f32.mrb[0].mxu1  ;;  %2376 = vperm.xlu1 %3453, %v3382_v48  }
 0x1bc   : > { %v3660_v62 = vpop.eup %3659  ;;  %v1193_v2 = vadd.f32 %v3109_v61, %v4255_v9  ;;  %v1184_v3 = vpop.f32.mrb[1].mxu1  ;;  %v1386_v4 = vpack.c.bf16 %v3658_v60, %v3654_v55  ;;  %v3391_v55 = vtrunc.f32 %v3894_v8  ;;  %v3386_v61 = vcvt.f32.s32 %v3385_v50 }
 0x1bd   : > { %v1185_v5 = vadd.f32 %v4255_v9, %v1184_v3  ;;  %v3110_v6 = vpop.f32.mrb[2].mxu1  ;;  %v1385_v7 = vpack.c.bf16 %v3660_v62, %v3656_v56  ;;  %v3895_v62 = vld [vmem:[%s4008_s22 + $0x128] sm:$0xff] }
 0x1be   : > { %3669 = vtanh.f32 %v1193_v2  ;;  %v1196_v13 = vadd.f32 %v3110_v6, %v4255_v9  ;;  %v1187_v14 = vpop.f32.mrb[3].mxu1  ;;  %v3389_v63 = vtrunc.f32 %v3895_v62  ;;  %2385 = vperm.xlu0 %3454, %v3388_v54  }
 0x1bf   : > { %3671 = vtanh.f32 %v1185_v5  ;;  %v1188_v15 = vadd.f32 %v4255_v9, %v1187_v14  ;;  %3179 = vmatprep.mubr.bf16.mxu1 %v1385_v7  ;;  %v3896_v5 = vld [vmem:[%s4008_s22 + $0x140] sm:$0xff]  ;;  %2382 = vperm.xlu1 %3453, %v3386_v61  }
 0x1c0   : > { %3673 = vtanh.f32 %v1196_v13  ;;  %3180 = vmatmul.mubr.bf16.gmra.mrb[56].mxu1 %v1386_v4  ;;  %v3392_v4 = vcvt.f32.s32 %v3391_v55  ;;  %v3395_v6 = vtrunc.f32 %v3896_v5  ;;  %v3390_v11 = vcvt.f32.s32 %v3389_v63  ;;  %v3905_v63 = vld [vmem:[%s4008_s22 + $0x178] sm:$0xff]  ;;  %v3906_v5 = vld [vmem:[%s4008_s22 + $0x190] sm:$0xff] }
 0x1c1   : > { %v3662_v19 = vpop.eup %3661  ;;  %3675 = vtanh.f32 %v1188_v15  ;;  %v3393_v13 = vtrunc.f32 %v3897_v12 }
 0x1c2   : > { %v3664_v20 = vpop.eup %3663  ;;  %v3396_v17 = vcvt.f32.s32 %v3395_v6  ;;  %2391 = vperm.xlu0 %3454, %v3392_v4   ;;  %v3415_v6 = vtrunc.f32 %v3906_v5 }
 0x1c3   : > { %v3666_v24 = vpop.eup %3665  ;;  %v3113_v25 = vpop.f32.mrb[4].mxu1  ;;  %2388 = vperm.xlu1 %3453, %v3390_v11  }
 0x1c4   : > { %v3668_v34 = vpop.eup %3667  ;;  %v1209_v29 = vadd.f32 %v3113_v25, %v4255_v9  ;;  %v1200_v30 = vpop.f32.mrb[5].mxu1  ;;  %v1388_v31 = vpack.c.bf16 %v3666_v24, %v3662_v19  ;;  %v3399_v19 = vtrunc.f32 %v3898_v18  ;;  %v3394_v25 = vcvt.f32.s32 %v3393_v13 }
 0x1c5   : > { %v1201_v32 = vadd.f32 %v4255_v9, %v1200_v30  ;;  %v3114_v33 = vpop.f32.mrb[6].mxu1  ;;  %v1387_v35 = vpack.c.bf16 %v3668_v34, %v3664_v20  ;;  %v3899_v34 = vld [vmem:[%s4008_s22 + $0x148] sm:$0xff] }
 0x1c6   : > { %3677 = vtanh.f32 %v1209_v29  ;;  %v1212_v39 = vadd.f32 %v3114_v33, %v4255_v9  ;;  %v1203_v40 = vpop.f32.mrb[7].mxu1  ;;  %v3397_v26 = vtrunc.f32 %v3899_v34  ;;  %2397 = vperm.xlu0 %3454, %v3396_v17  }
 0x1c7   : > { %3679 = vtanh.f32 %v1201_v32  ;;  %v1204_v41 = vadd.f32 %v4255_v9, %v1203_v40  ;;  %3183 = vmatprep.mubr.bf16.mxu1 %v1387_v35  ;;  %v3900_v32 = vld [vmem:[%s4008_s22 + $0x160] sm:$0xff]  ;;  %2394 = vperm.xlu1 %3453, %v3394_v25   ;;  %v3477_v25 = vld [vmem:[%s4838_s7 + $0x30] sm:$0xff]  }
 0x1c8   : > { %v3670_v42 = vpop.eup %3669  ;;  %3681 = vtanh.f32 %v1212_v39  ;;  %3184 = vmatmul.mubr.bf16.gmra.mrb[60].mxu1 %v1388_v31  ;;  %v3400_v31 = vcvt.f32.s32 %v3399_v19  ;;  %v3403_v33 = vtrunc.f32 %v3900_v32  ;;  %v3398_v37 = vcvt.f32.s32 %v3397_v26  ;;  %3231 = vmatprep.subr.bf16.mxu0 %v3477_v25 }
 0x1c9   : > { %v3672_v46 = vpop.eup %3671  ;;  %3683 = vtanh.f32 %v1204_v41  ;;  %v3401_v39 = vtrunc.f32 %v3901_v38  ;;  %3232 = vmatpush3.bf16.msra.mxu0 %v3477_v25  ;;  %v3919_v25 = vld [vmem:[%s4008_s22 + $0x1e8] sm:$0xff] }
 0x1ca   : > { %v3674_v47 = vpop.eup %3673  ;;  %v3404_v43 = vcvt.f32.s32 %v3403_v33  ;;  %2403 = vperm.xlu0 %3454, %v3400_v31   ;;  %v3910_v33 = vld [vmem:[%s4008_s22 + $0x1b0] sm:$0xff] }
 0x1cb   : > { %v3676_v51 = vpop.eup %3675  ;;  %v3117_v52 = vpop.f32.mrb[8].mxu1  ;;  %v1390_v53 = vpack.c.bf16 %v3674_v47, %v3670_v42  ;;  %2400 = vperm.xlu1 %3453, %v3398_v37  }
 0x1cc   : > { %v1225_v56 = vadd.f32 %v3117_v52, %v4255_v9  ;;  %v1216_v57 = vpop.f32.mrb[9].mxu1  ;;  %v1389_v58 = vpack.c.bf16 %v3676_v51, %v3672_v46  ;;  %v3402_v51 = vcvt.f32.s32 %v3401_v39  ;;  %v3903_v52 = vld [vmem:[%s4008_s22 + $0x168] sm:$0xff] }
 0x1cd   : > { %v1217_v59 = vadd.f32 %v4255_v9, %v1216_v57  ;;  %v3118_v60 = vpop.f32.mrb[10].mxu1  ;;  %v3408_v57 = vcvt.f32.s32 %v3407_v45 }
 0x1ce   : > { %3685 = vtanh.f32 %v1225_v56  ;;  %v1228_v0 = vadd.f32 %v3118_v60, %v4255_v9  ;;  %v1219_v1 = vpop.f32.mrb[11].mxu1  ;;  %3187 = vmatprep.mubr.bf16.mxu1 %v1389_v58  ;;  %v3904_v58 = vld [vmem:[%s4008_s22 + $0x180] sm:$0xff]  ;;  %2409 = vperm.xlu0 %3454, %v3404_v43  }
 0x1cf   : > { %3687 = vtanh.f32 %v1217_v59  ;;  %v1220_v2 = vadd.f32 %v4255_v9, %v1219_v1  ;;  %v3411_v59 = vtrunc.f32 %v3904_v58  ;;  %2406 = vperm.xlu1 %3453, %v3402_v51  }
 0x1d0   : > { %v3678_v3 = vpop.eup %3677  ;;  %3689 = vtanh.f32 %v1228_v0  ;;  %3188 = vmatmul.mubr.bf16.gmra.mrb[64].mxu1 %v1390_v53  ;;  %v3405_v53 = vtrunc.f32 %v3903_v52  ;;  %v3409_v0 = vtrunc.f32 %v3905_v63  ;;  %v3478_v52 = vld [vmem:[%s4838_s7 + $0x38] sm:$0xff]  }
 0x1d1   : > { %v3680_v7 = vpop.eup %3679  ;;  %3691 = vtanh.f32 %v1220_v2  ;;  %v3412_v4 = vcvt.f32.s32 %v3411_v59  ;;  %3233 = vmatprep.subr.bf16.mxu0 %v3478_v52 }
 0x1d2   : > { %v3682_v10 = vpop.eup %3681  ;;  %v3406_v62 = vcvt.f32.s32 %v3405_v53  ;;  %2415 = vperm.xlu0 %3454, %v3408_v57   ;;  %3234 = vmatpush3.bf16.msra.mxu0 %v3478_v52 }
 0x1d3   : > { %v3684_v14 = vpop.eup %3683  ;;  %v3121_v15 = vpop.f32.mrb[12].mxu1  ;;  %v1392_v16 = vpack.c.bf16 %v3682_v10, %v3678_v3 }
 0x1d4   : > { %v1241_v20 = vadd.f32 %v3121_v15, %v4255_v9  ;;  %v1232_v21 = vpop.f32.mrb[13].mxu1  ;;  %v1391_v22 = vpack.c.bf16 %v3684_v14, %v3680_v7  ;;  %v3410_v14 = vcvt.f32.s32 %v3409_v0  ;;  %v3907_v15 = vld [vmem:[%s4008_s22 + $0x188] sm:$0xff]  ;;  %2412 = vperm.xlu1 %3453, %v3406_v62  }
 0x1d5   : > { %v1233_v23 = vadd.f32 %v4255_v9, %v1232_v21  ;;  %v3122_v24 = vpop.f32.mrb[14].mxu1  ;;  %v3416_v21 = vcvt.f32.s32 %v3415_v6 }
 0x1d6   : > { %3693 = vtanh.f32 %v1241_v20  ;;  %v1244_v27 = vadd.f32 %v3122_v24, %v4255_v9  ;;  %v1235_v28 = vpop.f32.mrb[15].mxu1  ;;  %3191 = vmatprep.mubr.bf16.mxu1 %v1391_v22  ;;  %v3908_v22 = vld [vmem:[%s4008_s22 + $0x1a0] sm:$0xff]  ;;  %2421 = vperm.xlu0 %3454, %v3412_v4   ;;  %v3915_v4 = vld [vmem:[%s4008_s22 + $0x1c8] sm:$0xff] }
 0x1d7   : > { %3695 = vtanh.f32 %v1233_v23  ;;  %v1236_v29 = vadd.f32 %v4255_v9, %v1235_v28  ;;  %v3419_v23 = vtrunc.f32 %v3908_v22  ;;  %v3429_v5 = vtrunc.f32 %v3915_v4 }
 0x1d8   : > { %v3686_v30 = vpop.eup %3685  ;;  %3697 = vtanh.f32 %v1244_v27  ;;  %3192 = vmatmul.mubr.bf16.gmra.mrb[68].mxu1 %v1392_v16  ;;  %v3413_v16 = vtrunc.f32 %v3907_v15  ;;  %v3909_v27 = vld [vmem:[%s4008_s22 + $0x198] sm:$0xff]  ;;  %2418 = vperm.xlu1 %3453, %v3410_v14  }
 0x1d9   : > { %v3688_v35 = vpop.eup %3687  ;;  %3699 = vtanh.f32 %v1236_v29  ;;  %v3417_v28 = vtrunc.f32 %v3909_v27  ;;  %v3420_v32 = vcvt.f32.s32 %v3419_v23 }
 0x1da   : > { %v3690_v36 = vpop.eup %3689  ;;  %v3414_v26 = vcvt.f32.s32 %v3413_v16  ;;  %2427 = vperm.xlu0 %3454, %v3416_v21   ;;  %v3430_v16 = vcvt.f32.s32 %v3429_v5 }
 0x1db   : > { %v3692_v40 = vpop.eup %3691  ;;  %v3125_v41 = vpop.f32.mrb[16].mxu1  ;;  %v1394_v42 = vpack.c.bf16 %v3690_v36, %v3686_v30 }
 0x1dc   : > { %v1257_v46 = vadd.f32 %v3125_v41, %v4255_v9  ;;  %v1248_v47 = vpop.f32.mrb[17].mxu1  ;;  %v1393_v48 = vpack.c.bf16 %v3692_v40, %v3688_v35  ;;  %v3423_v35 = vtrunc.f32 %v3910_v33  ;;  %v3418_v41 = vcvt.f32.s32 %v3417_v28  ;;  %2424 = vperm.xlu1 %3453, %v3414_v26   ;;  %v4410_v33 = vld [vmem:[%s4837_s6] ss:$0 sm:$0xff] }
 0x1dd   : > { %v1249_v49 = vadd.f32 %v4255_v9, %v1248_v47  ;;  %v3126_v50 = vpop.f32.mrb[18].mxu1 }
 0x1de   : > { %3701 = vtanh.f32 %v1257_v46  ;;  %v1260_v54 = vadd.f32 %v3126_v50, %v4255_v9  ;;  %v1251_v8 = vpop.f32.mrb[19].mxu1  ;;  %3195 = vmatprep.mubr.bf16.mxu1 %v1393_v48  ;;  %v3424_v48 = vcvt.f32.s32 %v3423_v35  ;;  %2433 = vperm.xlu0 %3454, %v3420_v32  }
 0x1df   : > { %3703 = vtanh.f32 %v1249_v49  ;;  %v1252_v55 = vadd.f32 %v4255_v9, %v1251_v8  ;;  %v3912_v49 = vld [vmem:[%s4008_s22 + $0x1c0] sm:$0xff]  ;;  %v3913_v8 = vld [vmem:[%s4008_s22 + $0x1b8] sm:$0xff] }
 0x1e0   : > { %v3694_v56 = vpop.eup %3693  ;;  %3705 = vtanh.f32 %v1260_v54  ;;  %3196 = vmatmul.mubr.bf16.gmra.mrb[72].mxu1 %v1394_v42  ;;  %v3911_v42 = vld [vmem:[%s4008_s22 + $0x1a8] sm:$0xff]  ;;  %v3427_v50 = vtrunc.f32 %v3912_v49  ;;  %2430 = vperm.xlu1 %3453, %v3418_v41  }
 0x1e1   : > { %v3696_v60 = vpop.eup %3695  ;;  %3707 = vtanh.f32 %v1252_v55  ;;  %v3421_v43 = vtrunc.f32 %v3911_v42  ;;  %v3425_v55 = vtrunc.f32 %v3913_v8 }
 0x1e2   : > { %v3698_v61 = vpop.eup %3697  ;;  %v3428_v59 = vcvt.f32.s32 %v3427_v50  ;;  %2439 = vperm.xlu0 %3454, %v3424_v48  }
 0x1e3   : > { %v3700_v1 = vpop.eup %3699  ;;  %v3129_v2 = vpop.f32.mrb[20].mxu1  ;;  %v1396_v3 = vpack.c.bf16 %v3698_v61, %v3694_v56  ;;  %v3422_v54 = vcvt.f32.s32 %v3421_v43 }
 0x1e4   : > { %v1273_v7 = vadd.f32 %v3129_v2, %v4255_v9  ;;  %v1264_v10 = vpop.f32.mrb[21].mxu1  ;;  %v1395_v11 = vpack.c.bf16 %v3700_v1, %v3696_v60  ;;  %v3914_v60 = vld [vmem:[%s4008_s22 + $0x1d0] sm:$0xff] }
 0x1e5   : > { %v1265_v12 = vadd.f32 %v4255_v9, %v1264_v10  ;;  %v3130_v13 = vpop.f32.mrb[22].mxu1  ;;  %v3431_v61 = vtrunc.f32 %v3914_v60  ;;  %2436 = vperm.xlu1 %3453, %v3422_v54  }
 0x1e6   : > { %3709 = vtanh.f32 %v1273_v7  ;;  %v1276_v17 = vadd.f32 %v3130_v13, %v4255_v9  ;;  %v1267_v18 = vpop.f32.mrb[23].mxu1  ;;  %3199 = vmatprep.mubr.bf16.mxu1 %v1395_v11  ;;  %2445 = vperm.xlu0 %3454, %v3428_v59  }
 0x1e7   : > { %3711 = vtanh.f32 %v1265_v12  ;;  %v1268_v19 = vadd.f32 %v4255_v9, %v1267_v18  ;;  %v3432_v11 = vcvt.f32.s32 %v3431_v61  ;;  %v3916_v12 = vld [vmem:[%s4008_s22 + $0x1e0] sm:$0xff] }
 0x1e8   : > { %v3702_v20 = vpop.eup %3701  ;;  %3713 = vtanh.f32 %v1276_v17  ;;  %3200 = vmatmul.mubr.bf16.gmra.mrb[76].mxu1 %v1396_v3  ;;  %v3426_v3 = vcvt.f32.s32 %v3425_v55  ;;  %v3435_v13 = vtrunc.f32 %v3916_v12  ;;  %v3917_v17 = vld [vmem:[%s4008_s22 + $0x1d8] sm:$0xff] }
 0x1e9   : > { %v3704_v24 = vpop.eup %3703  ;;  %3715 = vtanh.f32 %v1268_v19  ;;  %v3433_v18 = vtrunc.f32 %v3917_v17 }
 0x1ea   : > { %v3706_v34 = vpop.eup %3705  ;;  %2442 = vperm.xlu1 %3453, %v3426_v3   ;;  %v3436_v21 = vcvt.f32.s32 %v3435_v13  ;;  %2451 = vperm.xlu0 %3454, %v3432_v11  }
 0x1eb   : > { %v3708_v29 = vpop.eup %3707  ;;  %v3133_v30 = vpop.f32.mrb[24].mxu1  ;;  %v1398_v31 = vpack.c.bf16 %v3706_v34, %v3702_v20  ;;  %v3437_v34 = vtrunc.f32 %v3919_v25 }
 0x1ec   : > { %v1289_v36 = vadd.f32 %v3133_v30, %v4255_v9  ;;  %v1280_v37 = vpop.f32.mrb[25].mxu1  ;;  %v1397_v38 = vpack.c.bf16 %v3708_v29, %v3704_v24  ;;  %v3434_v24 = vcvt.f32.s32 %v3433_v18 }
 0x1ed   : > { %v1281_v39 = vadd.f32 %v4255_v9, %v1280_v37  ;;  %v3134_v40 = vpop.f32.mrb[26].mxu1  ;;  %v3438_v29 = vcvt.f32.s32 %v3437_v34 }
 0x1ee   : > { %3717 = vtanh.f32 %v1289_v36  ;;  %v1292_v44 = vadd.f32 %v3134_v40, %v4255_v9  ;;  %v1283_v45 = vpop.f32.mrb[27].mxu1  ;;  %3203 = vmatprep.mubr.bf16.mxu1 %v1397_v38  ;;  %2448 = vperm.xlu1 %3453, %v3430_v16  }
 0x1ef   : > { %3719 = vtanh.f32 %v1281_v39  ;;  %v1284_v46 = vadd.f32 %v4255_v9, %v1283_v45  ;;  %2457 = vperm.xlu0 %3454, %v3436_v21  }
 0x1f0   : > { %v3710_v47 = vpop.eup %3709  ;;  %3721 = vtanh.f32 %v1292_v44  ;;  %3204 = vmatmul.mubr.bf16.gmra.mrb[80].mxu1 %v1398_v31 }
 0x1f1   : > { %v3712_v51 = vpop.eup %3711  ;;  %3723 = vtanh.f32 %v1284_v46 }
 0x1f2   : > { %v3714_v53 = vpop.eup %3713  ;;  %2454 = vperm.xlu1 %3453, %v3434_v24  }
 0x1f3   : > { %v3716_v56 = vpop.eup %3715  ;;  %v3137_v57 = vpop.f32.mrb[28].mxu1  ;;  %v1400_v58 = vpack.c.bf16 %v3714_v53, %v3710_v47 }
 0x1f4   : > { %v1305_v62 = vadd.f32 %v3137_v57, %v4255_v9  ;;  %v1296_v63 = vpop.f32.mrb[29].mxu1  ;;  %v1399_v0 = vpack.c.bf16 %v3716_v56, %v3712_v51 }
 0x1f5   : > { %v1297_v1 = vadd.f32 %v4255_v9, %v1296_v63  ;;  %v3138_v2 = vpop.f32.mrb[30].mxu1 }
 0x1f6   : > { %v1299_v6 = vpop.f32.mrb[31].mxu1  ;;  %3207 = vmatprep.mubr.bf16.mxu1 %v1399_v0  ;;  %3725 = vtanh.f32 %v1305_v62  ;;  %2460 = vperm.xlu1 %3453, %v3438_v29  }
 0x1f7   : > { %v1300_v7 = vadd.f32 %v4255_v9, %v1299_v6  ;;  %3727 = vtanh.f32 %v1297_v1  ;;  %v3918_v9 = vld [vmem:[%s4008_s22 + $0x1f0] sm:$0xff]  ;;  %s2717_s22 = sld [smem:[#allocation2]] }
 0x1f8   : > { %v3718_v10 = vpop.eup %3717  ;;  %3208 = vmatmul.mubr.bf16.gmra.mrb[84].mxu1 %v1400_v58  ;;  %v3439_v22 = vtrunc.f32 %v3918_v9 }
 0x1f9   : > { %v3720_v14 = vpop.eup %3719  ;;  %3729 = vtanh.f32 %v1300_v7 }
 0x1fa   : > { %v3722_v15 = vpop.eup %3721  ;;  %v3440_v26 = vcvt.f32.s32 %v3439_v22 }
 0x1fb   : > { %v3724_v19 = vpop.eup %3723  ;;  %v1402_v20 = vpack.c.bf16 %v3722_v15, %v3718_v10 }
 0x1fc   : > { %v1401_v23 = vpack.c.bf16 %v3724_v19, %v3720_v14  ;;  %2463 = vperm.xlu0 %3454, %v3440_v26  }
 0x1fe   : > { %3211 = vmatprep.mubr.bf16.mxu1 %v1401_v23 }
 0x200   : > { %3212 = vmatmul.mubr.bf16.gmra.mrb[88].mxu1 %v1402_v20  ;;  %v3726_v27 = vpop.eup %3725 }
 0x201   : > { %v3728_v28 = vpop.eup %3727  ;;  %v1404_v32 = vpack.c.bf16 %v3726_v27, %v3726_v27 }
 0x203   : > { %v3730_v30 = vpop.eup %3729 }
 0x204   : > { %v1403_v31 = vpack.c.bf16 %v3730_v30, %v3728_v28 }
 0x206   : > { %3215 = vmatprep.mubr.bf16.mxu1 %v1403_v31 }
 0x208   : > { %3216 = vmatmul.mubr.bf16.gmra.mrb[92].mxu1 %v1404_v32 }
 0x263   : > { %v3157_v35 = vpop.f32.mrb[32].mxu1 }
 0x264   : > { %v1519_v36 = vadd.f32 %v3157_v35, %v4410_v33  ;;  %v1510_v37 = vpop.f32.mrb[33].mxu1 }
 0x265   : > { %v1511_v38 = vadd.f32 %v4410_v33, %v1510_v37  ;;  %v3158_v39 = vpop.f32.mrb[34].mxu1 }
 0x266   : > { %3731 = vtanh.f32 %v1519_v36  ;;  %v1522_v40 = vadd.f32 %v3158_v39, %v4410_v33  ;;  %v1513_v41 = vpop.f32.mrb[35].mxu1 }
 0x267   : > { %3733 = vtanh.f32 %v1511_v38  ;;  %v1514_v42 = vadd.f32 %v4410_v33, %v1513_v41 }
 0x268   : > { %3735 = vtanh.f32 %v1522_v40 }
 0x269   : > { %3737 = vtanh.f32 %v1514_v42 }
 0x26b   : > { %v3161_v43 = vpop.f32.mrb[36].mxu1 }
 0x26c   : > { %v1535_v44 = vadd.f32 %v3161_v43, %v4410_v33  ;;  %v1526_v45 = vpop.f32.mrb[37].mxu1 }
 0x26d   : > { %v1527_v46 = vadd.f32 %v4410_v33, %v1526_v45  ;;  %v3162_v47 = vpop.f32.mrb[38].mxu1 }
 0x26e   : > { %3739 = vtanh.f32 %v1535_v44  ;;  %v1538_v48 = vadd.f32 %v3162_v47, %v4410_v33  ;;  %v1529_v49 = vpop.f32.mrb[39].mxu1 }
 0x26f   : > { %3741 = vtanh.f32 %v1527_v46  ;;  %v1530_v50 = vadd.f32 %v4410_v33, %v1529_v49 }
 0x270   : > { %v3732_v51 = vpop.eup %3731  ;;  %3743 = vtanh.f32 %v1538_v48 }
 0x271   : > { %v3734_v52 = vpop.eup %3733  ;;  %3745 = vtanh.f32 %v1530_v50 }
 0x272   : > { %v3736_v53 = vpop.eup %3735 }
 0x273   : > { %v3738_v54 = vpop.eup %3737  ;;  %v3165_v8 = vpop.f32.mrb[40].mxu1  ;;  %v1828_v55 = vpack.c.bf16 %v3736_v53, %v3732_v51 }
 0x274   : > { %v1551_v56 = vadd.f32 %v3165_v8, %v4410_v33  ;;  %v1542_v57 = vpop.f32.mrb[41].mxu1  ;;  %v1827_v58 = vpack.c.bf16 %v3738_v54, %v3734_v52 }
 0x275   : > { %v1543_v59 = vadd.f32 %v4410_v33, %v1542_v57  ;;  %v3166_v60 = vpop.f32.mrb[42].mxu1 }
 0x276   : > { %3747 = vtanh.f32 %v1551_v56  ;;  %v1554_v61 = vadd.f32 %v3166_v60, %v4410_v33  ;;  %v1545_v62 = vpop.f32.mrb[43].mxu1  ;;  %3235 = vmatprep.mubr.bf16.mxu0 %v1827_v58 }
 0x277   : > { %3749 = vtanh.f32 %v1543_v59  ;;  %v1546_v63 = vadd.f32 %v4410_v33, %v1545_v62  ;;  %3236 = vmatmul.mubr.bf16.vlgmr.msra.gmra.mrb[32].mxu0 %v1828_v55 }
 0x278   : > { %v3740_v0 = vpop.eup %3739  ;;  %3751 = vtanh.f32 %v1554_v61 }
 0x279   : > { %v3742_v1 = vpop.eup %3741  ;;  %3753 = vtanh.f32 %v1546_v63 }
 0x27a   : > { %v3744_v2 = vpop.eup %3743 }
 0x27b   : > { %v3746_v3 = vpop.eup %3745  ;;  %v3169_v4 = vpop.f32.mrb[44].mxu1  ;;  %v1830_v5 = vpack.c.bf16 %v3744_v2, %v3740_v0 }
 0x27c   : > { %v1567_v6 = vadd.f32 %v3169_v4, %v4410_v33  ;;  %v1558_v7 = vpop.f32.mrb[45].mxu1  ;;  %v1829_v10 = vpack.c.bf16 %v3746_v3, %v3742_v1 }
 0x27d   : > { %v1559_v11 = vadd.f32 %v4410_v33, %v1558_v7  ;;  %v3170_v12 = vpop.f32.mrb[46].mxu1 }
 0x27e   : > { %3755 = vtanh.f32 %v1567_v6  ;;  %v1570_v13 = vadd.f32 %v3170_v12, %v4410_v33  ;;  %v1561_v14 = vpop.f32.mrb[47].mxu1  ;;  %3239 = vmatprep.mubr.bf16.mxu0 %v1829_v10 }
 0x27f   : > { %3757 = vtanh.f32 %v1559_v11  ;;  %v1562_v15 = vadd.f32 %v4410_v33, %v1561_v14  ;;  %3240 = vmatmul.mubr.bf16.gmra.mrb[36].mxu0 %v1830_v5 }
 0x280   : > { %v3748_v16 = vpop.eup %3747  ;;  %3759 = vtanh.f32 %v1570_v13 }
 0x281   : > { %v3750_v17 = vpop.eup %3749  ;;  %3761 = vtanh.f32 %v1562_v15 }
 0x282   : > { %v3752_v18 = vpop.eup %3751 }
 0x283   : > { %v3754_v19 = vpop.eup %3753  ;;  %v3173_v20 = vpop.f32.mrb[48].mxu1  ;;  %v1832_v21 = vpack.c.bf16 %v3752_v18, %v3748_v16 }
 0x284   : > { %v1583_v9 = vadd.f32 %v3173_v20, %v4410_v33  ;;  %v1574_v22 = vpop.f32.mrb[49].mxu1  ;;  %v1831_v23 = vpack.c.bf16 %v3754_v19, %v3750_v17 }
 0x285   : > { %v1575_v24 = vadd.f32 %v4410_v33, %v1574_v22  ;;  %v3174_v25 = vpop.f32.mrb[50].mxu1 }
 0x286   : > { %3763 = vtanh.f32 %v1583_v9  ;;  %v1586_v34 = vadd.f32 %v3174_v25, %v4410_v33  ;;  %v1577_v26 = vpop.f32.mrb[51].mxu1  ;;  %3243 = vmatprep.mubr.bf16.mxu0 %v1831_v23 }
 0x287   : > { %3765 = vtanh.f32 %v1575_v24  ;;  %v1578_v27 = vadd.f32 %v4410_v33, %v1577_v26  ;;  %3244 = vmatmul.mubr.bf16.gmra.mrb[40].mxu0 %v1832_v21 }
 0x288   : > { %v3756_v28 = vpop.eup %3755  ;;  %3767 = vtanh.f32 %v1586_v34 }
 0x289   : > { %v3758_v29 = vpop.eup %3757  ;;  %3769 = vtanh.f32 %v1578_v27 }
 0x28a   : > { %v3760_v30 = vpop.eup %3759 }
 0x28b   : > { %v3762_v31 = vpop.eup %3761  ;;  %v3177_v32 = vpop.f32.mrb[52].mxu1  ;;  %v1834_v35 = vpack.c.bf16 %v3760_v30, %v3756_v28 }
 0x28c   : > { %v1599_v36 = vadd.f32 %v3177_v32, %v4410_v33  ;;  %v1590_v37 = vpop.f32.mrb[53].mxu1  ;;  %v1833_v38 = vpack.c.bf16 %v3762_v31, %v3758_v29 }
 0x28d   : > { %v1591_v39 = vadd.f32 %v4410_v33, %v1590_v37  ;;  %v3178_v40 = vpop.f32.mrb[54].mxu1 }
 0x28e   : > { %3771 = vtanh.f32 %v1599_v36  ;;  %v1602_v41 = vadd.f32 %v3178_v40, %v4410_v33  ;;  %v1593_v42 = vpop.f32.mrb[55].mxu1  ;;  %3247 = vmatprep.mubr.bf16.mxu0 %v1833_v38 }
 0x28f   : > { %3773 = vtanh.f32 %v1591_v39  ;;  %v1594_v43 = vadd.f32 %v4410_v33, %v1593_v42  ;;  %3248 = vmatmul.mubr.bf16.gmra.mrb[44].mxu0 %v1834_v35 }
 0x290   : > { %v3764_v44 = vpop.eup %3763  ;;  %3775 = vtanh.f32 %v1602_v41 }
 0x291   : > { %v3766_v45 = vpop.eup %3765  ;;  %3777 = vtanh.f32 %v1594_v43 }
 0x292   : > { %v3768_v46 = vpop.eup %3767 }
 0x293   : > { %v3770_v47 = vpop.eup %3769  ;;  %v3181_v48 = vpop.f32.mrb[56].mxu1  ;;  %v1836_v49 = vpack.c.bf16 %v3768_v46, %v3764_v44 }
 0x294   : > { %v1615_v50 = vadd.f32 %v3181_v48, %v4410_v33  ;;  %v1606_v51 = vpop.f32.mrb[57].mxu1  ;;  %v1835_v52 = vpack.c.bf16 %v3770_v47, %v3766_v45 }
 0x295   : > { %v1607_v53 = vadd.f32 %v4410_v33, %v1606_v51  ;;  %v3182_v54 = vpop.f32.mrb[58].mxu1 }
 0x296   : > { %3779 = vtanh.f32 %v1615_v50  ;;  %v1618_v8 = vadd.f32 %v3182_v54, %v4410_v33  ;;  %v1609_v55 = vpop.f32.mrb[59].mxu1  ;;  %3251 = vmatprep.mubr.bf16.mxu0 %v1835_v52 }
 0x297   : > { %3781 = vtanh.f32 %v1607_v53  ;;  %v1610_v56 = vadd.f32 %v4410_v33, %v1609_v55  ;;  %3252 = vmatmul.mubr.bf16.gmra.mrb[48].mxu0 %v1836_v49 }
 0x298   : > { %v3772_v57 = vpop.eup %3771  ;;  %3783 = vtanh.f32 %v1618_v8 }
 0x299   : > { %v3774_v58 = vpop.eup %3773  ;;  %3785 = vtanh.f32 %v1610_v56 }
 0x29a   : > { %v3776_v59 = vpop.eup %3775 }
 0x29b   : > { %v3778_v60 = vpop.eup %3777  ;;  %v3185_v61 = vpop.f32.mrb[60].mxu1  ;;  %v1838_v62 = vpack.c.bf16 %v3776_v59, %v3772_v57 }
 0x29c   : > { %v1631_v63 = vadd.f32 %v3185_v61, %v4410_v33  ;;  %v1622_v0 = vpop.f32.mrb[61].mxu1  ;;  %v1837_v1 = vpack.c.bf16 %v3778_v60, %v3774_v58 }
 0x29d   : > { %v1623_v2 = vadd.f32 %v4410_v33, %v1622_v0  ;;  %v3186_v3 = vpop.f32.mrb[62].mxu1 }
 0x29e   : > { %3787 = vtanh.f32 %v1631_v63  ;;  %v1634_v4 = vadd.f32 %v3186_v3, %v4410_v33  ;;  %v1625_v5 = vpop.f32.mrb[63].mxu1  ;;  %3255 = vmatprep.mubr.bf16.mxu0 %v1837_v1 }
 0x29f   : > { %3789 = vtanh.f32 %v1623_v2  ;;  %v1626_v6 = vadd.f32 %v4410_v33, %v1625_v5  ;;  %3256 = vmatmul.mubr.bf16.gmra.mrb[52].mxu0 %v1838_v62 }
 0x2a0   : > { %v3780_v7 = vpop.eup %3779  ;;  %3791 = vtanh.f32 %v1634_v4 }
 0x2a1   : > { %v3782_v10 = vpop.eup %3781  ;;  %3793 = vtanh.f32 %v1626_v6 }
 0x2a2   : > { %v3784_v11 = vpop.eup %3783 }
 0x2a3   : > { %v3786_v12 = vpop.eup %3785  ;;  %v3189_v13 = vpop.f32.mrb[64].mxu1  ;;  %v1840_v14 = vpack.c.bf16 %v3784_v11, %v3780_v7 }
 0x2a4   : > { %v1647_v15 = vadd.f32 %v3189_v13, %v4410_v33  ;;  %v1638_v16 = vpop.f32.mrb[65].mxu1  ;;  %v1839_v17 = vpack.c.bf16 %v3786_v12, %v3782_v10 }
 0x2a5   : > { %v1639_v18 = vadd.f32 %v4410_v33, %v1638_v16  ;;  %v3190_v19 = vpop.f32.mrb[66].mxu1 }
 0x2a6   : > { %3795 = vtanh.f32 %v1647_v15  ;;  %v1650_v20 = vadd.f32 %v3190_v19, %v4410_v33  ;;  %v1641_v21 = vpop.f32.mrb[67].mxu1  ;;  %3259 = vmatprep.mubr.bf16.mxu0 %v1839_v17 }
 0x2a7   : > { %3797 = vtanh.f32 %v1639_v18  ;;  %v1642_v9 = vadd.f32 %v4410_v33, %v1641_v21  ;;  %3260 = vmatmul.mubr.bf16.gmra.mrb[56].mxu0 %v1840_v14 }
 0x2a8   : > { %v3788_v22 = vpop.eup %3787  ;;  %3799 = vtanh.f32 %v1650_v20 }
 0x2a9   : > { %v3790_v23 = vpop.eup %3789  ;;  %3801 = vtanh.f32 %v1642_v9 }
 0x2aa   : > { %v3792_v24 = vpop.eup %3791 }
 0x2ab   : > { %v3794_v25 = vpop.eup %3793  ;;  %v3193_v34 = vpop.f32.mrb[68].mxu1  ;;  %v1842_v26 = vpack.c.bf16 %v3792_v24, %v3788_v22 }
 0x2ac   : > { %v1663_v27 = vadd.f32 %v3193_v34, %v4410_v33  ;;  %v1654_v28 = vpop.f32.mrb[69].mxu1  ;;  %v1841_v29 = vpack.c.bf16 %v3794_v25, %v3790_v23 }
 0x2ad   : > { %v1655_v30 = vadd.f32 %v4410_v33, %v1654_v28  ;;  %v3194_v31 = vpop.f32.mrb[70].mxu1 }
 0x2ae   : > { %3803 = vtanh.f32 %v1663_v27  ;;  %v1666_v32 = vadd.f32 %v3194_v31, %v4410_v33  ;;  %v1657_v35 = vpop.f32.mrb[71].mxu1  ;;  %3263 = vmatprep.mubr.bf16.mxu0 %v1841_v29 }
 0x2af   : > { %3805 = vtanh.f32 %v1655_v30  ;;  %v1658_v36 = vadd.f32 %v4410_v33, %v1657_v35  ;;  %3264 = vmatmul.mubr.bf16.gmra.mrb[60].mxu0 %v1842_v26 }
 0x2b0   : > { %v3796_v37 = vpop.eup %3795  ;;  %3807 = vtanh.f32 %v1666_v32 }
 0x2b1   : > { %v3798_v38 = vpop.eup %3797  ;;  %3809 = vtanh.f32 %v1658_v36 }
 0x2b2   : > { %v3800_v39 = vpop.eup %3799 }
 0x2b3   : > { %v3802_v40 = vpop.eup %3801  ;;  %v3197_v41 = vpop.f32.mrb[72].mxu1  ;;  %v1844_v42 = vpack.c.bf16 %v3800_v39, %v3796_v37 }
 0x2b4   : > { %v1679_v43 = vadd.f32 %v3197_v41, %v4410_v33  ;;  %v1670_v44 = vpop.f32.mrb[73].mxu1  ;;  %v1843_v45 = vpack.c.bf16 %v3802_v40, %v3798_v38 }
 0x2b5   : > { %v1671_v46 = vadd.f32 %v4410_v33, %v1670_v44  ;;  %v3198_v47 = vpop.f32.mrb[74].mxu1 }
 0x2b6   : > { %3811 = vtanh.f32 %v1679_v43  ;;  %v1682_v48 = vadd.f32 %v3198_v47, %v4410_v33  ;;  %v1673_v49 = vpop.f32.mrb[75].mxu1  ;;  %3267 = vmatprep.mubr.bf16.mxu0 %v1843_v45 }
 0x2b7   : > { %3813 = vtanh.f32 %v1671_v46  ;;  %v1674_v50 = vadd.f32 %v4410_v33, %v1673_v49  ;;  %3268 = vmatmul.mubr.bf16.gmra.mrb[64].mxu0 %v1844_v42 }
 0x2b8   : > { %v3804_v51 = vpop.eup %3803  ;;  %3815 = vtanh.f32 %v1682_v48 }
 0x2b9   : > { %v3806_v52 = vpop.eup %3805  ;;  %3817 = vtanh.f32 %v1674_v50 }
 0x2ba   : > { %v3808_v53 = vpop.eup %3807 }
 0x2bb   : > { %v3810_v54 = vpop.eup %3809  ;;  %v3201_v8 = vpop.f32.mrb[76].mxu1  ;;  %v1846_v55 = vpack.c.bf16 %v3808_v53, %v3804_v51 }
 0x2bc   : > { %v1695_v56 = vadd.f32 %v3201_v8, %v4410_v33  ;;  %v1686_v57 = vpop.f32.mrb[77].mxu1  ;;  %v1845_v58 = vpack.c.bf16 %v3810_v54, %v3806_v52 }
 0x2bd   : > { %v1687_v59 = vadd.f32 %v4410_v33, %v1686_v57  ;;  %v3202_v60 = vpop.f32.mrb[78].mxu1 }
 0x2be   : > { %3819 = vtanh.f32 %v1695_v56  ;;  %v1698_v61 = vadd.f32 %v3202_v60, %v4410_v33  ;;  %v1689_v62 = vpop.f32.mrb[79].mxu1  ;;  %3271 = vmatprep.mubr.bf16.mxu0 %v1845_v58 }
 0x2bf   : > { %3821 = vtanh.f32 %v1687_v59  ;;  %v1690_v63 = vadd.f32 %v4410_v33, %v1689_v62  ;;  %3272 = vmatmul.mubr.bf16.gmra.mrb[68].mxu0 %v1846_v55 }
 0x2c0   : > { %v3812_v0 = vpop.eup %3811  ;;  %3823 = vtanh.f32 %v1698_v61 }
 0x2c1   : > { %v3814_v1 = vpop.eup %3813  ;;  %3825 = vtanh.f32 %v1690_v63 }
 0x2c2   : > { %v3816_v2 = vpop.eup %3815 }
 0x2c3   : > { %v3818_v3 = vpop.eup %3817  ;;  %v3205_v4 = vpop.f32.mrb[80].mxu1  ;;  %v1848_v5 = vpack.c.bf16 %v3816_v2, %v3812_v0 }
 0x2c4   : > { %v1711_v6 = vadd.f32 %v3205_v4, %v4410_v33  ;;  %v1702_v7 = vpop.f32.mrb[81].mxu1  ;;  %v1847_v10 = vpack.c.bf16 %v3818_v3, %v3814_v1  ;;  %v2278_v3 = vpop.permute.xlu1 %2277 }
 0x2c5   : > { %v1703_v11 = vadd.f32 %v4410_v33, %v1702_v7  ;;  %v3206_v12 = vpop.f32.mrb[82].mxu1  ;;  %v2281_v4 = vpop.permute.xlu0 %2280 }
 0x2c6   : > { %3827 = vtanh.f32 %v1711_v6  ;;  %v1714_v13 = vadd.f32 %v3206_v12, %v4410_v33  ;;  %v1705_v14 = vpop.f32.mrb[83].mxu1  ;;  %3275 = vmatprep.mubr.bf16.mxu0 %v1847_v10 }
 0x2c7   : > { %3829 = vtanh.f32 %v1703_v11  ;;  %v1706_v15 = vadd.f32 %v4410_v33, %v1705_v14  ;;  %3276 = vmatmul.mubr.bf16.gmra.mrb[72].mxu0 %v1848_v5 }
 0x2c8   : > { %v3820_v16 = vpop.eup %3819  ;;  %3831 = vtanh.f32 %v1714_v13 }
 0x2c9   : > { %v3822_v17 = vpop.eup %3821  ;;  %3833 = vtanh.f32 %v1706_v15  ;;  %v2290_v6 = vpop.permute.xlu0 %2289 }
 0x2ca   : > { %v3824_v18 = vpop.eup %3823 }
 0x2cb   : > { %v3826_v19 = vpop.eup %3825  ;;  %v3209_v20 = vpop.f32.mrb[84].mxu1  ;;  %v1850_v21 = vpack.c.bf16 %v3824_v18, %v3820_v16 }
 0x2cc   : > { %v1727_v9 = vadd.f32 %v3209_v20, %v4410_v33  ;;  %v1718_v22 = vpop.f32.mrb[85].mxu1  ;;  %v1849_v23 = vpack.c.bf16 %v3826_v19, %v3822_v17 }
 0x2cd   : > { %v1719_v24 = vadd.f32 %v4410_v33, %v1718_v22  ;;  %v3210_v25 = vpop.f32.mrb[86].mxu1  ;;  %v2296_v10 = vpop.permute.xlu0 %2295  ;;  %v2211_v22 = vlaneseq }
 0x2ce   : > { %3835 = vtanh.f32 %v1727_v9  ;;  %v1730_v34 = vadd.f32 %v3210_v25, %v4410_v33  ;;  %v1721_v26 = vpop.f32.mrb[87].mxu1  ;;  %3279 = vmatprep.mubr.bf16.mxu0 %v1849_v23 }
 0x2cf   : > { %3837 = vtanh.f32 %v1719_v24  ;;  %v1722_v27 = vadd.f32 %v4410_v33, %v1721_v26  ;;  %3280 = vmatmul.mubr.bf16.gmra.mrb[76].mxu0 %v1850_v21  ;;  %v4497_v25 = vand.u32 127, %v2211_v22 }
 0x2d0   : > { %v3828_v28 = vpop.eup %3827  ;;  %3839 = vtanh.f32 %v1730_v34 }
 0x2d1   : > { %v3830_v29 = vpop.eup %3829  ;;  %3841 = vtanh.f32 %v1722_v27  ;;  %v4475_v12 = vpop.permute.xlu0 %2301  ;;  %vm2465_vm1 = vcmp.eq.s32.totalorder %v4497_v25, %v2278_v3  ;;  %vm2466_vm2 = vcmp.eq.s32.totalorder %v4497_v25, %v2281_v4  ;;  %vm2471_vm4 = vcmp.eq.s32.totalorder %v4497_v25, %v2296_v10 }
 0x2d2   : > { %v3832_v30 = vpop.eup %3831  ;;  %vm2469_vm6 = vcmp.eq.s32.totalorder %v4497_v25, %v2290_v6  ;;  %vm2473_vm10 = vcmp.eq.s32.totalorder %v4497_v25, %v4475_v12 }
 0x2d3   : > { %v3834_v31 = vpop.eup %3833  ;;  %v3213_v32 = vpop.f32.mrb[88].mxu1  ;;  %v1852_v35 = vpack.c.bf16 %v3832_v30, %v3828_v28 }
 0x2d4   : > { %v1743_v36 = vadd.f32 %v3213_v32, %v4410_v33  ;;  %v1734_v37 = vpop.f32.mrb[89].mxu1  ;;  %v1851_v38 = vpack.c.bf16 %v3834_v31, %v3830_v29 }
 0x2d5   : > { %v1735_v39 = vadd.f32 %v4410_v33, %v1734_v37  ;;  %v3214_v40 = vpop.f32.mrb[90].mxu1  ;;  %v2308_v14 = vpop.permute.xlu0 %2307 }
 0x2d6   : > { %3843 = vtanh.f32 %v1743_v36  ;;  %v1746_v41 = vadd.f32 %v3214_v40, %v4410_v33  ;;  %v1737_v42 = vpop.f32.mrb[91].mxu1  ;;  %3283 = vmatprep.mubr.bf16.mxu0 %v1851_v38  ;;  %vm2475_vm8 = vcmp.eq.s32.totalorder %v4497_v25, %v2308_v14 }
 0x2d7   : > { %3845 = vtanh.f32 %v1735_v39  ;;  %v1738_v43 = vadd.f32 %v4410_v33, %v1737_v42  ;;  %3284 = vmatmul.mubr.bf16.gmra.mrb[80].mxu0 %v1852_v35 }
 0x2d8   : > { %v3836_v44 = vpop.eup %3835  ;;  %3847 = vtanh.f32 %v1746_v41 }
 0x2d9   : > { %v3838_v45 = vpop.eup %3837  ;;  %3849 = vtanh.f32 %v1738_v43  ;;  %v4479_v16 = vpop.permute.xlu0 %2313 }
 0x2da   : > { %v3840_v46 = vpop.eup %3839  ;;  %vm2477_vm14 = vcmp.eq.s32.totalorder %v4497_v25, %v4479_v16 }
 0x2db   : > { %v3842_v47 = vpop.eup %3841  ;;  %v3217_v48 = vpop.f32.mrb[92].mxu1  ;;  %v1854_v49 = vpack.c.bf16 %v3840_v46, %v3836_v44 }
 0x2dc   : > { %v1759_v50 = vadd.f32 %v3217_v48, %v4410_v33  ;;  %v1750_v51 = vpop.f32.mrb[93].mxu1  ;;  %v1853_v52 = vpack.c.bf16 %v3842_v47, %v3838_v45 }
 0x2dd   : > { %v1751_v53 = vadd.f32 %v4410_v33, %v1750_v51  ;;  %v3218_v54 = vpop.f32.mrb[94].mxu1  ;;  %v4483_v18 = vpop.permute.xlu0 %2319 }
 0x2de   : > { %v1753_v8 = vpop.f32.mrb[95].mxu1  ;;  %3287 = vmatprep.mubr.bf16.mxu0 %v1853_v52  ;;  %3851 = vtanh.f32 %v1759_v50  ;;  %vm2479_vm12 = vcmp.eq.s32.totalorder %v4497_v25, %v4483_v18 }
 0x2df   : > { %v1754_v55 = vadd.f32 %v4410_v33, %v1753_v8  ;;  %3288 = vmatmul.mubr.bf16.gmra.mrb[84].mxu0 %v1854_v49  ;;  %3853 = vtanh.f32 %v1751_v53  ;;  %v2284_v33 = vpop.permute.xlu1 %2283 }
 0x2e0   : > { %v3844_v56 = vpop.eup %3843  ;;  %vm2467_vm0 = vcmp.eq.s32.totalorder %v4497_v25, %v2284_v33 }
 0x2e1   : > { %v3846_v57 = vpop.eup %3845  ;;  %3855 = vtanh.f32 %v1754_v55  ;;  %v4487_v20 = vpop.permute.xlu0 %2325 }
 0x2e2   : > { %v3848_v58 = vpop.eup %3847 }
 0x2e3   : > { %v3850_v59 = vpop.eup %3849  ;;  %v1856_v60 = vpack.c.bf16 %v3848_v58, %v3844_v56  ;;  %v2287_v5 = vpop.permute.xlu1 %2286 }
 0x2e4   : > { %v1855_v61 = vpack.c.bf16 %v3850_v59, %v3846_v57  ;;  %vm2468_vm3 = vcmp.eq.s32.totalorder %v4497_v25, %v2287_v5 }
 0x2e5   : > { %v4491_v9 = vpop.permute.xlu0 %2331 }
 0x2e6   : > { %3291 = vmatprep.mubr.bf16.mxu0 %v1855_v61 }
 0x2e7   : > { %3292 = vmatmul.mubr.bf16.gmra.mrb[88].mxu0 %v1856_v60  ;;  %v2293_v7 = vpop.permute.xlu1 %2292 }
 0x2e8   : > { %v3852_v62 = vpop.eup %3851  ;;  %vm2470_vm7 = vcmp.eq.s32.totalorder %v4497_v25, %v2293_v7 }
 0x2e9   : > { %v3854_v63 = vpop.eup %3853  ;;  %v1858_v2 = vpack.c.bf16 %v3852_v62, %v3852_v62  ;;  %v4495_v24 = vpop.permute.xlu0 %2337 }
 0x2eb   : > { %v3856_v0 = vpop.eup %3855  ;;  %v2299_v11 = vpop.permute.xlu1 %2298 }
 0x2ec   : > { %v1857_v1 = vpack.c.bf16 %v3856_v0, %v3854_v63  ;;  %vm2472_vm5 = vcmp.eq.s32.totalorder %v4497_v25, %v2299_v11 }
 0x2ed   : > { %v4503_v29 = vpop.permute.xlu0 %2343 }
 0x2ee   : > { %3295 = vmatprep.mubr.bf16.mxu0 %v1857_v1 }
 0x2ef   : > { %3296 = vmatmul.mubr.bf16.gmra.mrb[92].mxu0 %v1858_v2  ;;  %v4477_v13 = vpop.permute.xlu1 %2304 }
 0x2f0   : > { %vm2474_vm11 = vcmp.eq.s32.totalorder %v4497_v25, %v4477_v13 }
 0x2f1   : > { %v4509_v38 = vpop.permute.xlu0 %2349 }
 0x2f3   : > { %v2311_v15 = vpop.permute.xlu1 %2310 }
 0x2f4   : > { %vm2476_vm9 = vcmp.eq.s32.totalorder %v4497_v25, %v2311_v15 }
 0x2f5   : > { %v4516_v47 = vpop.permute.xlu0 %2355 }
 0x2f7   : > { %v4481_v17 = vpop.permute.xlu1 %2316 }
 0x2f8   : > { %vm2478_vm15 = vcmp.eq.s32.totalorder %v4497_v25, %v4481_v17 }
 0x2f9   : > { %v4523_v55 = vpop.permute.xlu0 %2361 }
 0x2fb   : > { %v4485_v19 = vpop.permute.xlu1 %2322 }
 0x2fc   : > { %vm2480_vm13 = vcmp.eq.s32.totalorder %v4497_v25, %v4485_v19 }
 0x2fd   : > { %v4533_v62 = vpop.permute.xlu0 %2367 }
 0x2ff   : > { %v4489_v21 = vpop.permute.xlu1 %2328 }
 0x301   : > { %v4543_v4 = vpop.permute.xlu0 %2373 }
 0x303   : > { %v4493_v23 = vpop.permute.xlu1 %2334 }
 0x305   : > { %v4553_v15 = vpop.permute.xlu0 %2379 }
 0x307   : > { %v4499_v34 = vpop.permute.xlu1 %2340 }
 0x30b   : > { %v4506_v36 = vpop.permute.xlu1 %2346 }
 0x30f   : > { %v4513_v43 = vpop.permute.xlu1 %2352 }
 0x313   : > { %v4520_v50 = vpop.permute.xlu1 %2358 }
 0x317   : > { %v4529_v57 = vpop.permute.xlu1 %2364 }
 0x31b   : > { %v4539_v2 = vpop.permute.xlu1 %2370 }
 0x31f   : > { %v4549_v11 = vpop.permute.xlu1 %2376 }
 0x323   : > { %v4559_v18 = vpop.permute.xlu1 %2382 }
 0x34a   : > { %v3237_v26 = vpop.f32.mrb[32].mxu0 }
 0x34b   : > { %v2530_v27 = vsel %vm2467_vm0, %v3237_v26, 0.0  ;;  %v1957_v28 = vpop.f32.mrb[33].mxu0  ;;  %vm2483_vm0 = vcmp.eq.s32.totalorder %v4497_v25, %v4491_v9  ;;  %v4563_v26 = vpop.permute.xlu0 %2385 }
 0x34c   : > { %v2528_v30 = vsel %vm2465_vm1, %v1957_v28, 0.0  ;;  %v3238_v31 = vpop.f32.mrb[34].mxu0  ;;  %2595 = vadd.xlane.f32.xlu0 %v2530_v27  ;;  %vm2484_vm1 = vcmp.eq.s32.totalorder %v4497_v25, %v4493_v23  ;;  %v4569_v27 = vpop.permute.xlu1 %2388 }
 0x34d   : > { %v1960_v32 = vpop.f32.mrb[35].mxu0  ;;  %2591 = vadd.xlane.f32.xlu1 %v2528_v30  ;;  %v2531_v37 = vsel %vm2468_vm3, %v3238_v31, 0.0  ;;  %vm2482_vm3 = vcmp.eq.s32.totalorder %v4497_v25, %v4489_v21 }
 0x34e   : > { %v2529_v35 = vsel %vm2466_vm2, %v1960_v32, 0.0  ;;  %vm2481_vm2 = vcmp.eq.s32.totalorder %v4497_v25, %v4487_v20 }
 0x350   : > { %2593 = vadd.xlane.f32.xlu0 %v2529_v35 }
 0x351   : > { %2597 = vadd.xlane.f32.xlu1 %v2531_v37 }
 0x352   : > { %v3241_v39 = vpop.f32.mrb[36].mxu0 }
 0x353   : > { %v2534_v40 = vsel %vm2471_vm4, %v3241_v39, 0.0  ;;  %v1973_v41 = vpop.f32.mrb[37].mxu0  ;;  %vm2487_vm4 = vcmp.eq.s32.totalorder %v4497_v25, %v4503_v29 }
 0x354   : > { %v3242_v42 = vpop.f32.mrb[38].mxu0  ;;  %2603 = vadd.xlane.f32.xlu0 %v2534_v40  ;;  %v2532_v46 = vsel %vm2469_vm6, %v1973_v41, 0.0  ;;  %vm2485_vm6 = vcmp.eq.s32.totalorder %v4497_v25, %v4495_v24  ;;  %v2392_v24 = vpop.permute.xlu0 %2391 }
 0x355   : > { %v2535_v44 = vsel %vm2472_vm5, %v3242_v42, 0.0  ;;  %v1976_v45 = vpop.f32.mrb[39].mxu0  ;;  %vm2488_vm5 = vcmp.eq.s32.totalorder %v4497_v25, %v4506_v36 }
 0x356   : > { %2605 = vadd.xlane.f32.xlu1 %v2535_v44  ;;  %v2533_v48 = vsel %vm2470_vm7, %v1976_v45, 0.0  ;;  %vm2486_vm7 = vcmp.eq.s32.totalorder %v4497_v25, %v4499_v34  ;;  %v2395_v34 = vpop.permute.xlu1 %2394 }
 0x358   : > { %2599 = vadd.xlane.f32.xlu0 %v2532_v46  ;;  %v4581_v40 = vpop.permute.xlu0 %2397 }
 0x35a   : > { %v3245_v49 = vpop.f32.mrb[40].mxu0  ;;  %2601 = vadd.xlane.f32.xlu1 %v2533_v48  ;;  %v4585_v45 = vpop.permute.xlu1 %2400 }
 0x35b   : > { %v2538_v51 = vsel %vm2475_vm8, %v3245_v49, 0.0  ;;  %v1989_v52 = vpop.f32.mrb[41].mxu0  ;;  %vm2491_vm8 = vcmp.eq.s32.totalorder %v4497_v25, %v4516_v47 }
 0x35c   : > { %v3246_v53 = vpop.f32.mrb[42].mxu0  ;;  %2611 = vadd.xlane.f32.xlu0 %v2538_v51  ;;  %v2536_v56 = vsel %vm2473_vm10, %v1989_v52, 0.0  ;;  %vm2489_vm10 = vcmp.eq.s32.totalorder %v4497_v25, %v4509_v38  ;;  %v2404_v48 = vpop.permute.xlu0 %2403 }
 0x35d   : > { %v2539_v54 = vsel %vm2476_vm9, %v3246_v53, 0.0  ;;  %v1992_v8 = vpop.f32.mrb[43].mxu0  ;;  %vm2492_vm9 = vcmp.eq.s32.totalorder %v4497_v25, %v4520_v50 }
 0x35e   : > { %2613 = vadd.xlane.f32.xlu1 %v2539_v54  ;;  %v2537_v58 = vsel %vm2474_vm11, %v1992_v8, 0.0  ;;  %vm2490_vm11 = vcmp.eq.s32.totalorder %v4497_v25, %v4513_v43  ;;  %v2407_v51 = vpop.permute.xlu1 %2406 }
 0x360   : > { %2607 = vadd.xlane.f32.xlu0 %v2536_v56  ;;  %v2410_v56 = vpop.permute.xlu0 %2409 }
 0x362   : > { %v3249_v59 = vpop.f32.mrb[44].mxu0  ;;  %2609 = vadd.xlane.f32.xlu1 %v2537_v58  ;;  %v2413_v58 = vpop.permute.xlu1 %2412 }
 0x363   : > { %v2542_v60 = vsel %vm2479_vm12, %v3249_v59, 0.0  ;;  %v2005_v61 = vpop.f32.mrb[45].mxu0  ;;  %vm2495_vm12 = vcmp.eq.s32.totalorder %v4497_v25, %v4533_v62 }
 0x364   : > { %v3250_v63 = vpop.f32.mrb[46].mxu0  ;;  %2619 = vadd.xlane.f32.xlu0 %v2542_v60  ;;  %v2540_v3 = vsel %vm2477_vm14, %v2005_v61, 0.0  ;;  %vm2493_vm14 = vcmp.eq.s32.totalorder %v4497_v25, %v4523_v55 }
 0x365   : > { %v2543_v0 = vsel %vm2480_vm13, %v3250_v63, 0.0  ;;  %v2008_v1 = vpop.f32.mrb[47].mxu0  ;;  %vm2496_vm13 = vcmp.eq.s32.totalorder %v4497_v25, %v4539_v2  ;;  %v2416_v63 = vpop.permute.xlu0 %2415 }
 0x366   : > { %2621 = vadd.xlane.f32.xlu1 %v2543_v0  ;;  %v2541_v33 = vsel %vm2478_vm15, %v2008_v1, 0.0  ;;  %vm2494_vm15 = vcmp.eq.s32.totalorder %v4497_v25, %v4529_v57 }
 0x368   : > { %2615 = vadd.xlane.f32.xlu0 %v2540_v3  ;;  %v2419_v3 = vpop.permute.xlu1 %2418 }
 0x36a   : > { %v3253_v5 = vpop.f32.mrb[48].mxu0  ;;  %2617 = vadd.xlane.f32.xlu1 %v2541_v33 }
 0x36b   : > { %v2546_v6 = vsel %vm2483_vm0, %v3253_v5, 0.0  ;;  %v2021_v7 = vpop.f32.mrb[49].mxu0  ;;  %vm2499_vm0 = vcmp.eq.s32.totalorder %v4497_v25, %v4553_v15  ;;  %v2422_v5 = vpop.permute.xlu0 %2421 }
 0x36c   : > { %v3254_v10 = vpop.f32.mrb[50].mxu0  ;;  %2627 = vadd.xlane.f32.xlu0 %v2546_v6  ;;  %v2544_v14 = vsel %vm2481_vm2, %v2021_v7, 0.0  ;;  %vm2497_vm2 = vcmp.eq.s32.totalorder %v4497_v25, %v4543_v4 }
 0x36d   : > { %v2547_v12 = vsel %vm2484_vm1, %v3254_v10, 0.0  ;;  %v2024_v13 = vpop.f32.mrb[51].mxu0  ;;  %vm2500_vm1 = vcmp.eq.s32.totalorder %v4497_v25, %v4559_v18 }
 0x36e   : > { %2629 = vadd.xlane.f32.xlu1 %v2547_v12  ;;  %v2545_v16 = vsel %vm2482_vm3, %v2024_v13, 0.0  ;;  %vm2498_vm3 = vcmp.eq.s32.totalorder %v4497_v25, %v4549_v11  ;;  %v2425_v12 = vpop.permute.xlu1 %2424 }
 0x370   : > { %2623 = vadd.xlane.f32.xlu0 %v2544_v14 }
 0x372   : > { %v3257_v17 = vpop.f32.mrb[52].mxu0  ;;  %2625 = vadd.xlane.f32.xlu1 %v2545_v16  ;;  %v2428_v16 = vpop.permute.xlu0 %2427 }
 0x373   : > { %v2550_v19 = vsel %vm2487_vm4, %v3257_v17, 0.0  ;;  %v2037_v9 = vpop.f32.mrb[53].mxu0  ;;  %vm2503_vm4 = vcmp.eq.s32.totalorder %v4497_v25, %v2392_v24 }
 0x374   : > { %v3258_v22 = vpop.f32.mrb[54].mxu0  ;;  %2635 = vadd.xlane.f32.xlu0 %v2550_v19  ;;  %v2548_v21 = vsel %vm2485_vm6, %v2037_v9, 0.0  ;;  %vm2501_vm6 = vcmp.eq.s32.totalorder %v4497_v25, %v4563_v26  ;;  %v2431_v19 = vpop.permute.xlu1 %2430 }
 0x375   : > { %v2551_v20 = vsel %vm2488_vm5, %v3258_v22, 0.0  ;;  %v2040_v23 = vpop.f32.mrb[55].mxu0  ;;  %vm2504_vm5 = vcmp.eq.s32.totalorder %v4497_v25, %v2395_v34 }
 0x376   : > { %2637 = vadd.xlane.f32.xlu1 %v2551_v20  ;;  %v2549_v28 = vsel %vm2486_vm7, %v2040_v23, 0.0  ;;  %vm2502_vm7 = vcmp.eq.s32.totalorder %v4497_v25, %v4569_v27 }
 0x378   : > { %2631 = vadd.xlane.f32.xlu0 %v2548_v21  ;;  %v2434_v21 = vpop.permute.xlu0 %2433 }
 0x37a   : > { %v3261_v29 = vpop.f32.mrb[56].mxu0  ;;  %2633 = vadd.xlane.f32.xlu1 %v2549_v28  ;;  %v2437_v28 = vpop.permute.xlu1 %2436 }
 0x37b   : > { %v2554_v30 = vsel %vm2491_vm8, %v3261_v29, 0.0  ;;  %v2053_v31 = vpop.f32.mrb[57].mxu0  ;;  %vm2507_vm8 = vcmp.eq.s32.totalorder %v4497_v25, %v2404_v48 }
 0x37c   : > { %v3262_v32 = vpop.f32.mrb[58].mxu0  ;;  %2643 = vadd.xlane.f32.xlu0 %v2554_v30  ;;  %v2552_v37 = vsel %vm2489_vm10, %v2053_v31, 0.0  ;;  %vm2505_vm10 = vcmp.eq.s32.totalorder %v4497_v25, %v4581_v40 }
 0x37d   : > { %v2555_v35 = vsel %vm2492_vm9, %v3262_v32, 0.0  ;;  %v2056_v36 = vpop.f32.mrb[59].mxu0  ;;  %vm2508_vm9 = vcmp.eq.s32.totalorder %v4497_v25, %v2407_v51  ;;  %v2440_v32 = vpop.permute.xlu0 %2439 }
 0x37e   : > { %2645 = vadd.xlane.f32.xlu1 %v2555_v35  ;;  %v2553_v39 = vsel %vm2490_vm11, %v2056_v36, 0.0  ;;  %vm2506_vm11 = vcmp.eq.s32.totalorder %v4497_v25, %v4585_v45 }
 0x380   : > { %2639 = vadd.xlane.f32.xlu0 %v2552_v37  ;;  %v2443_v37 = vpop.permute.xlu1 %2442 }
 0x382   : > { %v3265_v41 = vpop.f32.mrb[60].mxu0  ;;  %2641 = vadd.xlane.f32.xlu1 %v2553_v39 }
 0x383   : > { %v2558_v42 = vsel %vm2495_vm12, %v3265_v41, 0.0  ;;  %v2069_v44 = vpop.f32.mrb[61].mxu0  ;;  %vm2511_vm12 = vcmp.eq.s32.totalorder %v4497_v25, %v2416_v63  ;;  %v2446_v41 = vpop.permute.xlu0 %2445 }
 0x384   : > { %v3266_v38 = vpop.f32.mrb[62].mxu0  ;;  %2651 = vadd.xlane.f32.xlu0 %v2558_v42  ;;  %v2556_v47 = vsel %vm2493_vm14, %v2069_v44, 0.0  ;;  %vm2509_vm14 = vcmp.eq.s32.totalorder %v4497_v25, %v2410_v56 }
 0x385   : > { %v2559_v46 = vsel %vm2496_vm13, %v3266_v38, 0.0  ;;  %v2072_v43 = vpop.f32.mrb[63].mxu0  ;;  %vm2512_vm13 = vcmp.eq.s32.totalorder %v4497_v25, %v2419_v3 }
 0x386   : > { %2653 = vadd.xlane.f32.xlu1 %v2559_v46  ;;  %v2557_v49 = vsel %vm2494_vm15, %v2072_v43, 0.0  ;;  %vm2510_vm15 = vcmp.eq.s32.totalorder %v4497_v25, %v2413_v58  ;;  %v2449_v46 = vpop.permute.xlu1 %2448 }
 0x388   : > { %2647 = vadd.xlane.f32.xlu0 %v2556_v47 }
 0x38a   : > { %v3269_v50 = vpop.f32.mrb[64].mxu0  ;;  %2649 = vadd.xlane.f32.xlu1 %v2557_v49  ;;  %v2452_v49 = vpop.permute.xlu0 %2451 }
 0x38b   : > { %v2562_v52 = vsel %vm2499_vm0, %v3269_v50, 0.0  ;;  %v2085_v53 = vpop.f32.mrb[65].mxu0  ;;  %vm2515_vm0 = vcmp.eq.s32.totalorder %v4497_v25, %v2428_v16 }
 0x38c   : > { %v3270_v54 = vpop.f32.mrb[66].mxu0  ;;  %2659 = vadd.xlane.f32.xlu0 %v2562_v52  ;;  %v2560_v57 = vsel %vm2497_vm2, %v2085_v53, 0.0  ;;  %vm2513_vm2 = vcmp.eq.s32.totalorder %v4497_v25, %v2422_v5  ;;  %v2455_v52 = vpop.permute.xlu1 %2454 }
 0x38d   : > { %v2563_v8 = vsel %vm2500_vm1, %v3270_v54, 0.0  ;;  %v2088_v55 = vpop.f32.mrb[67].mxu0  ;;  %vm2516_vm1 = vcmp.eq.s32.totalorder %v4497_v25, %v2431_v19 }
 0x38e   : > { %2661 = vadd.xlane.f32.xlu1 %v2563_v8  ;;  %v2561_v59 = vsel %vm2498_vm3, %v2088_v55, 0.0  ;;  %vm2514_vm3 = vcmp.eq.s32.totalorder %v4497_v25, %v2425_v12 }
 0x390   : > { %2655 = vadd.xlane.f32.xlu0 %v2560_v57  ;;  %v2458_v57 = vpop.permute.xlu0 %2457 }
 0x392   : > { %v3273_v60 = vpop.f32.mrb[68].mxu0  ;;  %2657 = vadd.xlane.f32.xlu1 %v2561_v59 }
 0x393   : > { %v2566_v61 = vsel %vm2503_vm4, %v3273_v60, 0.0  ;;  %v2101_v62 = vpop.f32.mrb[69].mxu0  ;;  %vm2519_vm4 = vcmp.eq.s32.totalorder %v4497_v25, %v2440_v32  ;;  %v2461_v60 = vpop.permute.xlu1 %2460 }
 0x394   : > { %v3274_v0 = vpop.f32.mrb[70].mxu0  ;;  %2667 = vadd.xlane.f32.xlu0 %v2566_v61  ;;  %v2564_v33 = vsel %vm2501_vm6, %v2101_v62, 0.0  ;;  %vm2517_vm6 = vcmp.eq.s32.totalorder %v4497_v25, %v2434_v21  ;;  %v2464_v63 = vpop.permute.xlu0 %2463 }
 0x395   : > { %v2567_v1 = vsel %vm2504_vm5, %v3274_v0, 0.0  ;;  %v2104_v2 = vpop.f32.mrb[71].mxu0  ;;  %vm2520_vm5 = vcmp.eq.s32.totalorder %v4497_v25, %v2443_v37 }
 0x396   : > { %2669 = vadd.xlane.f32.xlu1 %v2567_v1  ;;  %v2565_v4 = vsel %vm2502_vm7, %v2104_v2, 0.0  ;;  %vm2518_vm7 = vcmp.eq.s32.totalorder %v4497_v25, %v2437_v28 }
 0x398   : > { %2663 = vadd.xlane.f32.xlu0 %v2564_v33 }
 0x39a   : > { %v3277_v6 = vpop.f32.mrb[72].mxu0  ;;  %2665 = vadd.xlane.f32.xlu1 %v2565_v4  ;;  %v4630_v4 = vstv %s2717_s22 }
 0x39b   : > { %v2570_v7 = vsel %vm2507_vm8, %v3277_v6, 0.0  ;;  %v2117_v10 = vpop.f32.mrb[73].mxu0  ;;  %vm2523_vm8 = vcmp.eq.s32.totalorder %v4497_v25, %v2452_v49 }
 0x39c   : > { %v3278_v11 = vpop.f32.mrb[74].mxu0  ;;  %2675 = vadd.xlane.f32.xlu0 %v2570_v7  ;;  %v2568_v15 = vsel %vm2505_vm10, %v2117_v10, 0.0  ;;  %vm2521_vm10 = vcmp.eq.s32.totalorder %v4497_v25, %v2446_v41 }
 0x39d   : > { %v2571_v13 = vsel %vm2508_vm9, %v3278_v11, 0.0  ;;  %v2120_v14 = vpop.f32.mrb[75].mxu0  ;;  %vm2524_vm9 = vcmp.eq.s32.totalorder %v4497_v25, %v2455_v52 }
 0x39e   : > { %2677 = vadd.xlane.f32.xlu1 %v2571_v13  ;;  %v2569_v17 = vsel %vm2506_vm11, %v2120_v14, 0.0  ;;  %vm2522_vm11 = vcmp.eq.s32.totalorder %v4497_v25, %v2449_v46 }
 0x3a0   : > { %2671 = vadd.xlane.f32.xlu0 %v2568_v15 }
 0x3a2   : > { %v3281_v18 = vpop.f32.mrb[76].mxu0  ;;  %2673 = vadd.xlane.f32.xlu1 %v2569_v17 }
 0x3a3   : > { %v2574_v9 = vsel %vm2511_vm12, %v3281_v18, 0.0  ;;  %v2133_v22 = vpop.f32.mrb[77].mxu0  ;;  %vm2525_vm12 = vcmp.eq.s32.totalorder %v4497_v25, %v2458_v57 }
 0x3a4   : > { %v3282_v20 = vpop.f32.mrb[78].mxu0  ;;  %2683 = vadd.xlane.f32.xlu0 %v2574_v9  ;;  %v2572_v27 = vsel %vm2509_vm14, %v2133_v22, 0.0  ;;  %vm2527_vm14 = vcmp.eq.s32.totalorder %v4497_v25, %v2464_v63 }
 0x3a5   : > { %v2575_v23 = vsel %vm2512_vm13, %v3282_v20, 0.0  ;;  %v2136_v26 = vpop.f32.mrb[79].mxu0  ;;  %vm2526_vm13 = vcmp.eq.s32.totalorder %v4497_v25, %v2461_v60 }
 0x3a6   : > { %2685 = vadd.xlane.f32.xlu1 %v2575_v23  ;;  %v2573_v29 = vsel %vm2510_vm15, %v2136_v26, 0.0  ;;  %vm2782_vm15 = vcmask 7168  }
 0x3a8   : > { %2679 = vadd.xlane.f32.xlu0 %v2572_v27 }
 0x3aa   : > { %v3285_v30 = vpop.f32.mrb[80].mxu0  ;;  %2681 = vadd.xlane.f32.xlu1 %v2573_v29 }
 0x3ab   : > { %v2578_v31 = vsel %vm2515_vm0, %v3285_v30, 0.0  ;;  %v2149_v24 = vpop.f32.mrb[81].mxu0 }
 0x3ac   : > { %v3286_v35 = vpop.f32.mrb[82].mxu0  ;;  %2691 = vadd.xlane.f32.xlu0 %v2578_v31  ;;  %v2576_v39 = vsel %vm2513_vm2, %v2149_v24, 0.0 }
 0x3ad   : > { %v2579_v36 = vsel %vm2516_vm1, %v3286_v35, 0.0  ;;  %v2152_v34 = vpop.f32.mrb[83].mxu0 }
 0x3ae   : > { %2693 = vadd.xlane.f32.xlu1 %v2579_v36  ;;  %v2577_v40 = vsel %vm2514_vm3, %v2152_v34, 0.0 }
 0x3b0   : > { %2687 = vadd.xlane.f32.xlu0 %v2576_v39 }
 0x3b2   : > { %v3289_v42 = vpop.f32.mrb[84].mxu0  ;;  %2689 = vadd.xlane.f32.xlu1 %v2577_v40 }
 0x3b3   : > { %v2582_v44 = vsel %vm2519_vm4, %v3289_v42, 0.0  ;;  %v2165_v38 = vpop.f32.mrb[85].mxu0 }
 0x3b4   : > { %v3290_v45 = vpop.f32.mrb[86].mxu0  ;;  %2699 = vadd.xlane.f32.xlu0 %v2582_v44  ;;  %v2580_v48 = vsel %vm2517_vm6, %v2165_v38, 0.0 }
 0x3b5   : > { %v2583_v43 = vsel %vm2520_vm5, %v3290_v45, 0.0  ;;  %v2168_v47 = vpop.f32.mrb[87].mxu0 }
 0x3b6   : > { %2701 = vadd.xlane.f32.xlu1 %v2583_v43  ;;  %v2581_v50 = vsel %vm2518_vm7, %v2168_v47, 0.0 }
 0x3b8   : > { %2695 = vadd.xlane.f32.xlu0 %v2580_v48 }
 0x3ba   : > { %v3293_v51 = vpop.f32.mrb[88].mxu0  ;;  %2697 = vadd.xlane.f32.xlu1 %v2581_v50 }
 0x3bb   : > { %v2586_v53 = vsel %vm2523_vm8, %v3293_v51, 0.0  ;;  %v2181_v54 = vpop.f32.mrb[89].mxu0 }
 0x3bc   : > { %v3294_v8 = vpop.f32.mrb[90].mxu0  ;;  %2707 = vadd.xlane.f32.xlu0 %v2586_v53  ;;  %v2584_v58 = vsel %vm2521_vm10, %v2181_v54, 0.0 }
 0x3bd   : > { %v2587_v55 = vsel %vm2524_vm9, %v3294_v8, 0.0  ;;  %v2184_v56 = vpop.f32.mrb[91].mxu0 }
 0x3be   : > { %2709 = vadd.xlane.f32.xlu1 %v2587_v55  ;;  %v2585_v59 = vsel %vm2522_vm11, %v2184_v56, 0.0 }
 0x3c0   : > { %2703 = vadd.xlane.f32.xlu0 %v2584_v58 }
 0x3c2   : > { %v3297_v61 = vpop.f32.mrb[92].mxu0  ;;  %2705 = vadd.xlane.f32.xlu1 %v2585_v59 }
 0x3c3   : > { %v2197_v62 = vpop.f32.mrb[93].mxu0  ;;  %v2590_v33 = vsel %vm2527_vm14, %v3297_v61, 0.0 }
 0x3c4   : > { %v2588_v0 = vsel %vm2525_vm12, %v2197_v62, 0.0  ;;  %v3298_v1 = vpop.f32.mrb[94].mxu0 }
 0x3c5   : > { %v2200_v2 = vpop.f32.mrb[95].mxu0  ;;  %2711 = vadd.xlane.f32.xlu0 %v2588_v0 }
 0x3c6   : > { %v2589_v3 = vsel %vm2526_vm13, %v2200_v2, 0.0 }
 0x3c7   : > { %2713 = vadd.xlane.f32.xlu1 %v2589_v3 }
 0x3c9   : > { %2715 = vadd.xlane.f32.xlu0 %v2590_v33 }
 0x3d9   : > { %v2596_v5 = vpop.xlane.xlu0 %2595 }
 0x3da   : > { %v2721_v25 = vadd.f32 %v4630_v4, %v2596_v5  ;;  %v2592_v6 = vpop.xlane.xlu1 %2591 }
 0x3db   : > { %v2719_v7 = vadd.f32 %v4630_v4, %v2592_v6 }
 0x3dc   : > { %2785 = vst.msk [vmem:[%s4637_s20 + $0x10] sm:$0xff] %vm2782_vm15, %v2721_v25 }
 0x3dd   : > { %2783 = vst.msk [vmem:[%s4637_s20] sm:$0xff] %vm2782_vm15, %v2719_v7  ;;  %v2594_v10 = vpop.xlane.xlu0 %2593 }
 0x3de   : > { %v2720_v11 = vadd.f32 %v4630_v4, %v2594_v10  ;;  %v2598_v12 = vpop.xlane.xlu1 %2597 }
 0x3df   : > { %v2722_v13 = vadd.f32 %v4630_v4, %v2598_v12 }
 0x3e0   : > { %2784 = vst.msk [vmem:[%s4637_s20 + $0x8] sm:$0xff] %vm2782_vm15, %v2720_v11 }
 0x3e1   : > { %2786 = vst.msk [vmem:[%s4637_s20 + $0x18] sm:$0xff] %vm2782_vm15, %v2722_v13  ;;  %v2604_v14 = vpop.xlane.xlu0 %2603 }
 0x3e2   : > { %v2725_v15 = vadd.f32 %v4630_v4, %v2604_v14 }
 0x3e3   : > { %v2606_v16 = vpop.xlane.xlu1 %2605 }
 0x3e4   : > { %2789 = vst.msk [vmem:[%s4637_s20 + $0x30] sm:$0xff] %vm2782_vm15, %v2725_v15  ;;  %v2726_v17 = vadd.f32 %v4630_v4, %v2606_v16 }
 0x3e5   : > { %v2600_v18 = vpop.xlane.xlu0 %2599 }
 0x3e6   : > { %2790 = vst.msk [vmem:[%s4637_s20 + $0x38] sm:$0xff] %vm2782_vm15, %v2726_v17  ;;  %v2723_v19 = vadd.f32 %v4630_v4, %v2600_v18 }
 0x3e7   : > { %v2602_v9 = vpop.xlane.xlu1 %2601 }
 0x3e8   : > { %2787 = vst.msk [vmem:[%s4637_s20 + $0x20] sm:$0xff] %vm2782_vm15, %v2723_v19  ;;  %v2724_v22 = vadd.f32 %v4630_v4, %v2602_v9 }
 0x3e9   : > { %v2612_v20 = vpop.xlane.xlu0 %2611 }
 0x3ea   : > { %2788 = vst.msk [vmem:[%s4637_s20 + $0x28] sm:$0xff] %vm2782_vm15, %v2724_v22  ;;  %v2729_v23 = vadd.f32 %v4630_v4, %v2612_v20 }
 0x3eb   : > { %v2614_v26 = vpop.xlane.xlu1 %2613 }
 0x3ec   : > { %2793 = vst.msk [vmem:[%s4637_s20 + $0x50] sm:$0xff] %vm2782_vm15, %v2729_v23  ;;  %v2730_v21 = vadd.f32 %v4630_v4, %v2614_v26 }
 0x3ed   : > { %v2608_v27 = vpop.xlane.xlu0 %2607 }
 0x3ee   : > { %2794 = vst.msk [vmem:[%s4637_s20 + $0x58] sm:$0xff] %vm2782_vm15, %v2730_v21  ;;  %v2727_v28 = vadd.f32 %v4630_v4, %v2608_v27 }
 0x3ef   : > { %v2610_v29 = vpop.xlane.xlu1 %2609 }
 0x3f0   : > { %2791 = vst.msk [vmem:[%s4637_s20 + $0x40] sm:$0xff] %vm2782_vm15, %v2727_v28  ;;  %v2728_v30 = vadd.f32 %v4630_v4, %v2610_v29 }
 0x3f1   : > { %v2620_v31 = vpop.xlane.xlu0 %2619 }
 0x3f2   : > { %2792 = vst.msk [vmem:[%s4637_s20 + $0x48] sm:$0xff] %vm2782_vm15, %v2728_v30  ;;  %v2733_v24 = vadd.f32 %v4630_v4, %v2620_v31 }
 0x3f3   : > { %v2622_v32 = vpop.xlane.xlu1 %2621 }
 0x3f4   : > { %2797 = vst.msk [vmem:[%s4637_s20 + $0x70] sm:$0xff] %vm2782_vm15, %v2733_v24  ;;  %v2734_v35 = vadd.f32 %v4630_v4, %v2622_v32 }
 0x3f5   : > { %v2616_v36 = vpop.xlane.xlu0 %2615 }
 0x3f6   : > { %2798 = vst.msk [vmem:[%s4637_s20 + $0x78] sm:$0xff] %vm2782_vm15, %v2734_v35  ;;  %v2731_v34 = vadd.f32 %v4630_v4, %v2616_v36 }
 0x3f7   : > { %v2618_v37 = vpop.xlane.xlu1 %2617 }
 0x3f8   : > { %2795 = vst.msk [vmem:[%s4637_s20 + $0x60] sm:$0xff] %vm2782_vm15, %v2731_v34  ;;  %v2732_v39 = vadd.f32 %v4630_v4, %v2618_v37 }
 0x3f9   : > { %v2628_v40 = vpop.xlane.xlu0 %2627 }
 0x3fa   : > { %2796 = vst.msk [vmem:[%s4637_s20 + $0x68] sm:$0xff] %vm2782_vm15, %v2732_v39  ;;  %v2737_v41 = vadd.f32 %v4630_v4, %v2628_v40 }
 0x3fb   : > { %v2630_v42 = vpop.xlane.xlu1 %2629 }
 0x3fc   : > { %2801 = vst.msk [vmem:[%s4637_s20 + $0x90] sm:$0xff] %vm2782_vm15, %v2737_v41  ;;  %v2738_v44 = vadd.f32 %v4630_v4, %v2630_v42 }
 0x3fd   : > { %v2624_v38 = vpop.xlane.xlu0 %2623 }
 0x3fe   : > { %2802 = vst.msk [vmem:[%s4637_s20 + $0x98] sm:$0xff] %vm2782_vm15, %v2738_v44  ;;  %v2735_v45 = vadd.f32 %v4630_v4, %v2624_v38 }
 0x3ff   : > { %v2626_v46 = vpop.xlane.xlu1 %2625 }
 0x400   : > { %2799 = vst.msk [vmem:[%s4637_s20 + $0x80] sm:$0xff] %vm2782_vm15, %v2735_v45  ;;  %v2736_v43 = vadd.f32 %v4630_v4, %v2626_v46 }
 0x401   : > { %v2636_v47 = vpop.xlane.xlu0 %2635 }
 0x402   : > { %2800 = vst.msk [vmem:[%s4637_s20 + $0x88] sm:$0xff] %vm2782_vm15, %v2736_v43  ;;  %v2741_v48 = vadd.f32 %v4630_v4, %v2636_v47 }
 0x403   : > { %v2638_v49 = vpop.xlane.xlu1 %2637 }
 0x404   : > { %2805 = vst.msk [vmem:[%s4637_s20 + $0xb0] sm:$0xff] %vm2782_vm15, %v2741_v48  ;;  %v2742_v50 = vadd.f32 %v4630_v4, %v2638_v49 }
 0x405   : > { %v2632_v51 = vpop.xlane.xlu0 %2631 }
 0x406   : > { %2806 = vst.msk [vmem:[%s4637_s20 + $0xb8] sm:$0xff] %vm2782_vm15, %v2742_v50  ;;  %v2739_v52 = vadd.f32 %v4630_v4, %v2632_v51 }
 0x407   : > { %v2634_v53 = vpop.xlane.xlu1 %2633 }
 0x408   : > { %2803 = vst.msk [vmem:[%s4637_s20 + $0xa0] sm:$0xff] %vm2782_vm15, %v2739_v52  ;;  %v2740_v54 = vadd.f32 %v4630_v4, %v2634_v53 }
 0x409   : > { %v2644_v8 = vpop.xlane.xlu0 %2643 }
 0x40a   : > { %2804 = vst.msk [vmem:[%s4637_s20 + $0xa8] sm:$0xff] %vm2782_vm15, %v2740_v54  ;;  %v2745_v55 = vadd.f32 %v4630_v4, %v2644_v8 }
 0x40b   : > { %v2646_v56 = vpop.xlane.xlu1 %2645 }
 0x40c   : > { %2809 = vst.msk [vmem:[%s4637_s20 + $0xd0] sm:$0xff] %vm2782_vm15, %v2745_v55  ;;  %v2746_v57 = vadd.f32 %v4630_v4, %v2646_v56 }
 0x40d   : > { %v2640_v58 = vpop.xlane.xlu0 %2639 }
 0x40e   : > { %2810 = vst.msk [vmem:[%s4637_s20 + $0xd8] sm:$0xff] %vm2782_vm15, %v2746_v57  ;;  %v2743_v59 = vadd.f32 %v4630_v4, %v2640_v58 }
 0x40f   : > { %v2642_v60 = vpop.xlane.xlu1 %2641 }
 0x410   : > { %2807 = vst.msk [vmem:[%s4637_s20 + $0xc0] sm:$0xff] %vm2782_vm15, %v2743_v59  ;;  %v2744_v61 = vadd.f32 %v4630_v4, %v2642_v60 }
 0x411   : > { %v2652_v62 = vpop.xlane.xlu0 %2651 }
 0x412   : > { %2808 = vst.msk [vmem:[%s4637_s20 + $0xc8] sm:$0xff] %vm2782_vm15, %v2744_v61  ;;  %v2749_v63 = vadd.f32 %v4630_v4, %v2652_v62 }
 0x413   : > { %v2654_v0 = vpop.xlane.xlu1 %2653 }
 0x414   : > { %2813 = vst.msk [vmem:[%s4637_s20 + $0xf0] sm:$0xff] %vm2782_vm15, %v2749_v63  ;;  %v2750_v1 = vadd.f32 %v4630_v4, %v2654_v0 }
 0x415   : > { %v2648_v2 = vpop.xlane.xlu0 %2647 }
 0x416   : > { %2814 = vst.msk [vmem:[%s4637_s20 + $0xf8] sm:$0xff] %vm2782_vm15, %v2750_v1  ;;  %v2747_v3 = vadd.f32 %v4630_v4, %v2648_v2 }
 0x417   : > { %v2650_v33 = vpop.xlane.xlu1 %2649 }
 0x418   : > { %2811 = vst.msk [vmem:[%s4637_s20 + $0xe0] sm:$0xff] %vm2782_vm15, %v2747_v3  ;;  %v2748_v5 = vadd.f32 %v4630_v4, %v2650_v33 }
 0x419   : > { %v2660_v25 = vpop.xlane.xlu0 %2659 }
 0x41a   : > { %2812 = vst.msk [vmem:[%s4637_s20 + $0xe8] sm:$0xff] %vm2782_vm15, %v2748_v5  ;;  %v2753_v6 = vadd.f32 %v4630_v4, %v2660_v25 }
 0x41b   : > { %v2662_v7 = vpop.xlane.xlu1 %2661 }
 0x41c   : > { %2817 = vst.msk [vmem:[%s4637_s20 + $0x110] sm:$0xff] %vm2782_vm15, %v2753_v6  ;;  %v2754_v10 = vadd.f32 %v4630_v4, %v2662_v7 }
 0x41d   : > { %v2656_v11 = vpop.xlane.xlu0 %2655 }
 0x41e   : > { %2818 = vst.msk [vmem:[%s4637_s20 + $0x118] sm:$0xff] %vm2782_vm15, %v2754_v10  ;;  %v2751_v12 = vadd.f32 %v4630_v4, %v2656_v11 }
 0x41f   : > { %v2658_v13 = vpop.xlane.xlu1 %2657 }
 0x420   : > { %2815 = vst.msk [vmem:[%s4637_s20 + $0x100] sm:$0xff] %vm2782_vm15, %v2751_v12  ;;  %v2752_v14 = vadd.f32 %v4630_v4, %v2658_v13 }
 0x421   : > { %v2668_v15 = vpop.xlane.xlu0 %2667 }
 0x422   : > { %2816 = vst.msk [vmem:[%s4637_s20 + $0x108] sm:$0xff] %vm2782_vm15, %v2752_v14  ;;  %v2757_v16 = vadd.f32 %v4630_v4, %v2668_v15 }
 0x423   : > { %v2670_v17 = vpop.xlane.xlu1 %2669 }
 0x424   : > { %2821 = vst.msk [vmem:[%s4637_s20 + $0x130] sm:$0xff] %vm2782_vm15, %v2757_v16  ;;  %v2758_v18 = vadd.f32 %v4630_v4, %v2670_v17 }
 0x425   : > { %v2664_v19 = vpop.xlane.xlu0 %2663 }
 0x426   : > { %2822 = vst.msk [vmem:[%s4637_s20 + $0x138] sm:$0xff] %vm2782_vm15, %v2758_v18  ;;  %v2755_v9 = vadd.f32 %v4630_v4, %v2664_v19 }
 0x427   : > { %v2666_v22 = vpop.xlane.xlu1 %2665 }
 0x428   : > { %2819 = vst.msk [vmem:[%s4637_s20 + $0x120] sm:$0xff] %vm2782_vm15, %v2755_v9  ;;  %v2756_v20 = vadd.f32 %v4630_v4, %v2666_v22 }
 0x429   : > { %v2676_v23 = vpop.xlane.xlu0 %2675 }
 0x42a   : > { %2820 = vst.msk [vmem:[%s4637_s20 + $0x128] sm:$0xff] %vm2782_vm15, %v2756_v20  ;;  %v2761_v26 = vadd.f32 %v4630_v4, %v2676_v23 }
 0x42b   : > { %v2678_v21 = vpop.xlane.xlu1 %2677 }
 0x42c   : > { %2825 = vst.msk [vmem:[%s4637_s20 + $0x150] sm:$0xff] %vm2782_vm15, %v2761_v26  ;;  %v2762_v27 = vadd.f32 %v4630_v4, %v2678_v21 }
 0x42d   : > { %v2672_v28 = vpop.xlane.xlu0 %2671 }
 0x42e   : > { %2826 = vst.msk [vmem:[%s4637_s20 + $0x158] sm:$0xff] %vm2782_vm15, %v2762_v27  ;;  %v2759_v29 = vadd.f32 %v4630_v4, %v2672_v28 }
 0x42f   : > { %v2674_v30 = vpop.xlane.xlu1 %2673 }
 0x430   : > { %2823 = vst.msk [vmem:[%s4637_s20 + $0x140] sm:$0xff] %vm2782_vm15, %v2759_v29  ;;  %v2760_v31 = vadd.f32 %v4630_v4, %v2674_v30 }
 0x431   : > { %v2684_v24 = vpop.xlane.xlu0 %2683 }
 0x432   : > { %2824 = vst.msk [vmem:[%s4637_s20 + $0x148] sm:$0xff] %vm2782_vm15, %v2760_v31  ;;  %v2765_v32 = vadd.f32 %v4630_v4, %v2684_v24 }
 0x433   : > { %v2686_v35 = vpop.xlane.xlu1 %2685 }
 0x434   : > { %2829 = vst.msk [vmem:[%s4637_s20 + $0x170] sm:$0xff] %vm2782_vm15, %v2765_v32  ;;  %v2766_v36 = vadd.f32 %v4630_v4, %v2686_v35 }
 0x435   : > { %v2680_v34 = vpop.xlane.xlu0 %2679 }
 0x436   : > { %2830 = vst.msk [vmem:[%s4637_s20 + $0x178] sm:$0xff] %vm2782_vm15, %v2766_v36  ;;  %v2763_v37 = vadd.f32 %v4630_v4, %v2680_v34 }
 0x437   : > { %v2682_v39 = vpop.xlane.xlu1 %2681 }
 0x438   : > { %2827 = vst.msk [vmem:[%s4637_s20 + $0x160] sm:$0xff] %vm2782_vm15, %v2763_v37  ;;  %v2764_v40 = vadd.f32 %v4630_v4, %v2682_v39 }
 0x439   : > { %v2692_v41 = vpop.xlane.xlu0 %2691 }
 0x43a   : > { %2828 = vst.msk [vmem:[%s4637_s20 + $0x168] sm:$0xff] %vm2782_vm15, %v2764_v40  ;;  %v2769_v42 = vadd.f32 %v4630_v4, %v2692_v41 }
 0x43b   : > { %v2694_v44 = vpop.xlane.xlu1 %2693 }
 0x43c   : > { %2833 = vst.msk [vmem:[%s4637_s20 + $0x190] sm:$0xff] %vm2782_vm15, %v2769_v42  ;;  %v2770_v38 = vadd.f32 %v4630_v4, %v2694_v44 }
 0x43d   : > { %v2688_v45 = vpop.xlane.xlu0 %2687 }
 0x43e   : > { %2834 = vst.msk [vmem:[%s4637_s20 + $0x198] sm:$0xff] %vm2782_vm15, %v2770_v38  ;;  %v2767_v46 = vadd.f32 %v4630_v4, %v2688_v45 }
 0x43f   : > { %v2690_v43 = vpop.xlane.xlu1 %2689 }
 0x440   : > { %2831 = vst.msk [vmem:[%s4637_s20 + $0x180] sm:$0xff] %vm2782_vm15, %v2767_v46  ;;  %v2768_v47 = vadd.f32 %v4630_v4, %v2690_v43 }
 0x441   : > { %v2700_v48 = vpop.xlane.xlu0 %2699 }
 0x442   : > { %2832 = vst.msk [vmem:[%s4637_s20 + $0x188] sm:$0xff] %vm2782_vm15, %v2768_v47  ;;  %v2773_v49 = vadd.f32 %v4630_v4, %v2700_v48 }
 0x443   : > { %v2702_v50 = vpop.xlane.xlu1 %2701 }
 0x444   : > { %2837 = vst.msk [vmem:[%s4637_s20 + $0x1b0] sm:$0xff] %vm2782_vm15, %v2773_v49  ;;  %v2774_v51 = vadd.f32 %v4630_v4, %v2702_v50 }
 0x445   : > { %v2696_v52 = vpop.xlane.xlu0 %2695 }
 0x446   : > { %2838 = vst.msk [vmem:[%s4637_s20 + $0x1b8] sm:$0xff] %vm2782_vm15, %v2774_v51  ;;  %v2771_v53 = vadd.f32 %v4630_v4, %v2696_v52 }
 0x447   : > { %v2698_v54 = vpop.xlane.xlu1 %2697 }
 0x448   : > { %2835 = vst.msk [vmem:[%s4637_s20 + $0x1a0] sm:$0xff] %vm2782_vm15, %v2771_v53  ;;  %v2772_v8 = vadd.f32 %v4630_v4, %v2698_v54 }
 0x449   : > { %v2708_v55 = vpop.xlane.xlu0 %2707 }
 0x44a   : > { %2836 = vst.msk [vmem:[%s4637_s20 + $0x1a8] sm:$0xff] %vm2782_vm15, %v2772_v8  ;;  %v2777_v56 = vadd.f32 %v4630_v4, %v2708_v55 }
 0x44b   : > { %v2710_v57 = vpop.xlane.xlu1 %2709 }
 0x44c   : > { %2841 = vst.msk [vmem:[%s4637_s20 + $0x1d0] sm:$0xff] %vm2782_vm15, %v2777_v56  ;;  %v2778_v58 = vadd.f32 %v4630_v4, %v2710_v57 }
 0x44d   : > { %v2704_v59 = vpop.xlane.xlu0 %2703 }
 0x44e   : > { %2842 = vst.msk [vmem:[%s4637_s20 + $0x1d8] sm:$0xff] %vm2782_vm15, %v2778_v58  ;;  %v2775_v60 = vadd.f32 %v4630_v4, %v2704_v59 }
 0x44f   : > { %v2706_v61 = vpop.xlane.xlu1 %2705 }
 0x450   : > { %2839 = vst.msk [vmem:[%s4637_s20 + $0x1c0] sm:$0xff] %vm2782_vm15, %v2775_v60  ;;  %v2776_v62 = vadd.f32 %v4630_v4, %v2706_v61 }
 0x452   : > { %2840 = vst.msk [vmem:[%s4637_s20 + $0x1c8] sm:$0xff] %vm2782_vm15, %v2776_v62  ;;  %v2712_v63 = vpop.xlane.xlu0 %2711 }
 0x453   : > { %v2779_v0 = vadd.f32 %v4630_v4, %v2712_v63 }
 0x454   : > { %v2714_v1 = vpop.xlane.xlu1 %2713 }
 0x455   : > { %2843 = vst.msk [vmem:[%s4637_s20 + $0x1e0] sm:$0xff] %vm2782_vm15, %v2779_v0  ;;  %v2780_v2 = vadd.f32 %v4630_v4, %v2714_v1 }
 0x456   : > { %v2716_v3 = vpop.xlane.xlu0 %2715 }
 0x457   : > { %2844 = vst.msk [vmem:[%s4637_s20 + $0x1e8] sm:$0xff] %vm2782_vm15, %v2780_v2  ;;  %v2781_v33 = vadd.f32 %v4630_v4, %v2716_v3 }
 0x459   : > { %2845 = vst.msk [vmem:[%s4637_s20 + $0x1f0] sm:$0xff] %vm2782_vm15, %v2781_v33 }
 0x45a PF: > { %s20_s11 = sadd.s32 1, %s3926_s11  }
 0x45b   : > { %p17_p4 = scmp.ge.s32.totalorder %s20_s11, 4  }
 0x45d   :  { %19 = sbr.rel (!%p17_p4) target bundleno = 2 (0x2), region = 86 }

</bundles_post_ra>
